<compile_context>
chip_gen: v7x
topology: tpu7x:2x2x1
jax: 0.10.0
libtpu: 0.0.40
codegen_flags: <defaults>
</compile_context>

<pallas_src>
import functools
import math

import jax
import jax.numpy as jnp
import numpy as np
from jax import lax
from jax.experimental import pallas as pl
from jax.experimental.pallas import tpu as pltpu

# Additive "masked" bias. exp(s + NEG_BIAS - rowmax) underflows to exactly 0 in f32.
# NOTE: unlike the reference's -inf + nan_to_num(0.0), a *fully*-masked row would give a
# uniform distribution instead of zeros; causal + block-diagonal masks never produce one.
NEG_BIAS = -1e30


# --------------------------- fused decoder-layer kernel ---------------------------

def _layer_norm(s):
    # LayerNorm with gamma=1, beta=0, eps=1e-5 (fresh LayerNorm in ResidualNorm).
    mean = jnp.mean(s, axis=-1, keepdims=True)
    c = s - mean
    var = jnp.mean(c * c, axis=-1, keepdims=True)
    return c * lax.rsqrt(var + 1e-5)


def _decoder_layer_kernel(x_ref, self_bias_ref, cross_bias_ref,
                          wqkv_s, bqkv_s, wo_s, bo_s,
                          wqkv_c, bqkv_c, wo_c, bo_c,
                          w1, b1, w2, b2,
                          o_ref, *, heads):
    """One full decoder layer for the whole (flattened) batch, entirely in VMEM."""
    x = x_ref[...]                               # (T, D) f32, T = N*L
    T, D = x.shape
    dh = D // heads
    scale = 1.0 / math.sqrt(dh)

    self_bias = self_bias_ref[...]               # (T, T) additive bias (mask + batch block)
    cross_bias = cross_bias_ref[...]             # (T, T) batch block-diagonal bias only

    def mha(x_in, wqkv_r, bqkv_r, wo_r, bo_r, bias):
        # Fused QKV projection: one (T,D)x(D,3D) bf16 matmul (lane-dense 3D output).
        xb = x_in.astype(jnp.bfloat16)
        qkv = (jnp.dot(xb, wqkv_r[...], preferred_element_type=jnp.float32)
               + bqkv_r[...])
        q = (qkv[:, 0:D] * scale).astype(jnp.bfloat16)   # fold 1/sqrt(dh) into q once
        k = qkv[:, D:2 * D].astype(jnp.bfloat16)
        v = qkv[:, 2 * D:3 * D].astype(jnp.bfloat16)
        wo_full = wo_r[...]                               # (D, D) bf16, loaded once

        out = jnp.zeros((T, D), jnp.float32)
        # Static unroll over heads (heads=4). Each head accumulates straight into the
        # output projection -> no lane-sparse scratch stores, no store->load dependency.
        # TODO(synk): for heads >~ 8 switch to lax.fori_loop(unroll=True); once dh >= 128
        # the per-head lane slices become lane-dense and the MXU is fully utilized.
        for h in range(heads):
            lo = h * dh
            qh = q[:, lo:lo + dh]
            kh = k[:, lo:lo + dh]
            vh = v[:, lo:lo + dh]
            s = lax.dot_general(qh, kh, (((1,), (1,)), ((), ())),
                                preferred_element_type=jnp.float32)   # (T, T)
            s = s + bias                                   # single additive masked bias
            rmax = jnp.max(s, axis=-1, keepdims=True)
            p = jnp.exp(s - rmax)
            denom = jnp.sum(p, axis=-1, keepdims=True)
            attn = (p * pl.reciprocal(denom, approx=True)).astype(jnp.bfloat16)  # EUP slot
            hv = jnp.dot(attn, vh, preferred_element_type=jnp.float32)           # (T, dh)
            out = out + jnp.dot(hv.astype(jnp.bfloat16), wo_full[lo:lo + dh, :],
                                preferred_element_type=jnp.float32)
        return out + bo_r[...]

    # --- self attention + residual LayerNorm (LN fused as epilogue) ---
    s1 = _layer_norm(x + mha(x, wqkv_s, bqkv_s, wo_s, bo_s, self_bias))
    # --- "cross" attention (encoder memory is None -> attends over s1) ---
    e = _layer_norm(s1 + mha(s1, wqkv_c, bqkv_c, wo_c, bo_c, cross_bias))
    # --- feed-forward: Linear -> LeakyReLU(0.01) -> Linear, + residual LayerNorm ---
    hdn = (jnp.dot(e.astype(jnp.bfloat16), w1[...], preferred_element_type=jnp.float32)
           + b1[...])
    hdn = jnp.where(hdn >= 0, hdn, 0.01 * hdn)
    d = (jnp.dot(hdn.astype(jnp.bfloat16), w2[...], preferred_element_type=jnp.float32)
         + b2[...])
    o_ref[...] = _layer_norm(e + d)


# ------------------------------ Pallas wrapper ------------------------------

def decoder_layer(x2d, self_bias, cross_bias, lp, heads):
    """One fused decoder layer as a single pallas_call over the flattened batch."""
    T, D = x2d.shape
    kern = functools.partial(_decoder_layer_kernel, heads=heads)

    def full_spec(shape):
        # whole-array block, single grid step -> loaded into VMEM exactly once
        return pl.BlockSpec(shape, lambda i, _n=len(shape): (0,) * _n)

    weights = [lp["self"]["wqkv"], lp["self"]["bqkv"], lp["self"]["wo"], lp["self"]["bo"],
               lp["cross"]["wqkv"], lp["cross"]["bqkv"], lp["cross"]["wo"], lp["cross"]["bo"],
               lp["ffn"]["w1"], lp["ffn"]["b1"], lp["ffn"]["w2"], lp["ffn"]["b2"]]

    inputs = [x2d, self_bias, cross_bias] + weights
    in_specs = [full_spec(a.shape) for a in inputs]

    # Advisory cost so XLA packs the back-to-back per-layer calls tightly.
    flops = int(2 * (2 * T * D * 3 * D        # fused QKV (x2 attentions)
                     + 2 * 2 * T * T * D      # scores + attn@v (x2 attentions)
                     + 2 * T * D * D)         # output projection (x2 attentions)
                + 2 * 2 * T * D * D)          # FFN
    transcendentals = int(2 * heads * T * T)
    bytes_accessed = int(sum(int(np.prod(a.shape)) * a.dtype.itemsize for a in inputs)
                         + T * D * 4)

    return pl.pallas_call(
        kern,
        out_shape=jax.ShapeDtypeStruct((T, D), jnp.float32),
        grid=(1,),
        in_specs=in_specs,
        out_specs=full_spec((T, D)),
        compiler_params=pltpu.CompilerParams(
            dimension_semantics=("arbitrary",),
            vmem_limit_bytes=64 * 1024 * 1024),
        cost_estimate=pl.CostEstimate(flops=flops,
                                      transcendentals=transcendentals,
                                      bytes_accessed=bytes_accessed),
    )(*inputs)


def decoder_forward(packed_params, response, mask, enc_mem, heads):
    # TODO(synk): external encoder memory (setMemory) path not implemented in the fused
    # kernel; the module default (encoderMemory=None) attends over the self-attn output.
    assert enc_mem is None, "fused kernel implements the encoderMemory=None path"
    N, L, D = response.shape
    T = N * L

    # Precompute the additive softmax biases ONCE (shared across layers and heads):
    #   cross_bias: block-diagonal over the flattened batch (no cross-batch attention)
    #   self_bias : cross_bias combined with the user mask (mask==0 -> NEG_BIAS)
    batch_ids = jnp.arange(T, dtype=jnp.int32) // L
    same_batch = batch_ids[:, None] == batch_ids[None, :]
    cross_bias = jnp.where(same_batch, 0.0, NEG_BIAS).astype(jnp.float32)
    if mask is not None:
        m = mask.astype(jnp.float32)
        if m.ndim == 2:
            m = jnp.broadcast_to(m[None], (N, L, L))
        # scatter per-batch (L,L) masks onto the block diagonal of the (T,T) score bias
        m_full = jnp.einsum("bij,bc->bicj", m, jnp.eye(N, dtype=jnp.float32)).reshape(T, T)
        self_bias = jnp.where(same_batch & (m_full > 0), 0.0, NEG_BIAS).astype(jnp.float32)
    else:
        self_bias = cross_bias

    x = response.reshape(T, D)
    for lp in packed_params["layers"]:
        x = decoder_layer(x, self_bias, cross_bias, lp, heads)
    return x.reshape(N, L, D)


# ------------------------------- Parameter init -------------------------------

def _init_linear(key, din, dout):
    kw, kb = jax.random.split(key)
    bound = 1.0 / math.sqrt(din)
    w = jax.random.uniform(kw, (din, dout), jnp.float32, -bound, bound)
    b = jax.random.uniform(kb, (dout,), jnp.float32, -bound, bound)
    return w, b


def _init_mha(key, dim):
    p = {}
    for name, kk in zip(["q", "k", "v", "o"], jax.random.split(key, 4)):
        w, b = _init_linear(kk, dim, dim)
        p["w" + name] = w
        p["b" + name] = b
    return p


def init_decoder_params(key, dim, stack):
    layers = []
    for _ in range(stack):
        key, k_self, k_cross, k_f1, k_f2 = jax.random.split(key, 5)
        w1, b1 = _init_linear(k_f1, dim, dim)   # linearStack[2i+1] (inner, pre-activation)
        w2, b2 = _init_linear(k_f2, dim, dim)   # linearStack[2i]   (outer)
        layers.append({
            "self": _init_mha(k_self, dim),
            "cross": _init_mha(k_cross, dim),
            "ffn": {"w1": w1, "b1": b1, "w2": w2, "b2": b2},
        })
    return {"layers": layers}


def pack_decoder_params(params):
    """Fuse Q/K/V into one (D, 3D) weight per MHA and store matmul weights as bf16."""
    wdt = jnp.bfloat16

    def pack_mha(p):
        return {
            "wqkv": jnp.concatenate([p["wq"], p["wk"], p["wv"]], axis=1).astype(wdt),
            "bqkv": jnp.concatenate([p["bq"], p["bk"], p["bv"]]).reshape(1, -1),
            "wo": p["wo"].astype(wdt),
            "bo": p["bo"].reshape(1, -1),
        }

    layers = []
    for layer in params["layers"]:
        layers.append({
            "self": pack_mha(layer["self"]),
            "cross": pack_mha(layer["cross"]),
            "ffn": {
                "w1": layer["ffn"]["w1"].astype(wdt), "b1": layer["ffn"]["b1"].reshape(1, -1),
                "w2": layer["ffn"]["w2"].astype(wdt), "b2": layer["ffn"]["b2"].reshape(1, -1),
            },
        })
    return {"layers": layers}


# --------------------------- Pure-JAX reference check --------------------------

def ref_forward(params, response, mask, enc_mem, heads):
    def lin(x, w, b):
        return x @ w + b

    def mha(xq, xkv, p, msk):
        N, Lq, D = xq.shape
        Lk = xkv.shape[1]
        dh = D // heads
        q = lin(xq, p["wq"], p["bq"]).reshape(N, Lq, heads, dh).transpose(0, 2, 1, 3)
        k = lin(xkv, p["wk"], p["bk"]).reshape(N, Lk, heads, dh).transpose(0, 2, 1, 3)
        v = lin(xkv, p["wv"], p["bv"]).reshape(N, Lk, heads, dh).transpose(0, 2, 1, 3)
        s = jnp.einsum("nhqd,nhkd->nhqk", q, k) / math.sqrt(dh)
        if msk is not None:
            s = jnp.where(msk[:, None].astype(bool), s, -jnp.inf)
        a = jnp.nan_to_num(jax.nn.softmax(s, axis=-1), nan=0.0)
        o = jnp.einsum("nhqk,nhkd->nhqd", a, v).transpose(0, 2, 1, 3).reshape(N, Lq, D)
        return lin(o, p["wo"], p["bo"])

    def ln(s):
        mean = s.mean(-1, keepdims=True)
        var = ((s - mean) ** 2).mean(-1, keepdims=True)
        return (s - mean) / jnp.sqrt(var + 1e-5)

    x = response
    for layer in params["layers"]:
        s1 = ln(x + mha(x, x, layer["self"], mask))
        kv = enc_mem if enc_mem is not None else s1
        e = ln(s1 + mha(s1, kv, layer["cross"], None))
        h = lin(e, layer["ffn"]["w1"], layer["ffn"]["b1"])
        h = jnp.where(h >= 0, h, 0.01 * h)
        d = lin(h, layer["ffn"]["w2"], layer["ffn"]["b2"])
        x = ln(e + d)
    return x


# ------------------------------------ Main ------------------------------------

if __name__ == "__main__":
    N, L, D, H = 2, 8, 32, 4     # batch, seq, model dim, heads (head dim = 8)
    STACK = 1

    key = jax.random.PRNGKey(0)
    k_params, k_x = jax.random.split(key)
    params = init_decoder_params(k_params, D, STACK)
    packed = pack_decoder_params(params)
    response = jax.random.normal(k_x, (N, L, D), jnp.float32)
    mask = jnp.broadcast_to(jnp.tril(jnp.ones((L, L), jnp.float32)), (N, L, L))

    out = decoder_forward(packed, response, mask, None, H)
    out = jax.block_until_ready(out)

    ref = ref_forward(params, response, mask, None, H)
    np.testing.assert_allclose(np.asarray(out), np.asarray(ref), rtol=2e-2, atol=2e-2)
    assert out.shape == (N, L, D) and bool(jnp.all(jnp.isfinite(out)))
    print("KERNEL_OK")
</pallas_src>

<mosaic_0001>
module attributes {stable_mosaic.version = 11 : i64} {
  func.func @_decoder_layer_kernel(%arg0: i32, %arg1: memref<16x32xf32, #tpu.memory_space<vmem>>, %arg2: memref<16x16xf32, #tpu.memory_space<vmem>>, %arg3: memref<16x16xf32, #tpu.memory_space<vmem>>, %arg4: memref<32x96xbf16, #tpu.memory_space<vmem>>, %arg5: memref<1x96xf32, #tpu.memory_space<vmem>>, %arg6: memref<32x32xbf16, #tpu.memory_space<vmem>>, %arg7: memref<1x32xf32, #tpu.memory_space<vmem>>, %arg8: memref<32x96xbf16, #tpu.memory_space<vmem>>, %arg9: memref<1x96xf32, #tpu.memory_space<vmem>>, %arg10: memref<32x32xbf16, #tpu.memory_space<vmem>>, %arg11: memref<1x32xf32, #tpu.memory_space<vmem>>, %arg12: memref<32x32xbf16, #tpu.memory_space<vmem>>, %arg13: memref<1x32xf32, #tpu.memory_space<vmem>>, %arg14: memref<32x32xbf16, #tpu.memory_space<vmem>>, %arg15: memref<1x32xf32, #tpu.memory_space<vmem>>, %arg16: memref<16x32xf32, #tpu.memory_space<vmem>>) attributes {dimension_semantics = [#tpu.dimension_semantics<arbitrary>], iteration_bounds = array<i64: 1>, scalar_prefetch = 0 : i64, scratch_operands = 0 : i64, tpu.core_type = #tpu.core_type<tc>, window_params = [{pipeline_mode = #tpu.pipeline_mode<synchronous>, transform_indices = @transform_0, window_bounds = array<i64: 16, 32>}, {pipeline_mode = #tpu.pipeline_mode<synchronous>, transform_indices = @transform_1, window_bounds = array<i64: 16, 16>}, {pipeline_mode = #tpu.pipeline_mode<synchronous>, transform_indices = @transform_2, window_bounds = array<i64: 16, 16>}, {pipeline_mode = #tpu.pipeline_mode<synchronous>, transform_indices = @transform_3, window_bounds = array<i64: 32, 96>}, {pipeline_mode = #tpu.pipeline_mode<synchronous>, transform_indices = @transform_4, window_bounds = array<i64: 1, 96>}, {pipeline_mode = #tpu.pipeline_mode<synchronous>, transform_indices = @transform_5, window_bounds = array<i64: 32, 32>}, {pipeline_mode = #tpu.pipeline_mode<synchronous>, transform_indices = @transform_6, window_bounds = array<i64: 1, 32>}, {pipeline_mode = #tpu.pipeline_mode<synchronous>, transform_indices = @transform_7, window_bounds = array<i64: 32, 96>}, {pipeline_mode = #tpu.pipeline_mode<synchronous>, transform_indices = @transform_8, window_bounds = array<i64: 1, 96>}, {pipeline_mode = #tpu.pipeline_mode<synchronous>, transform_indices = @transform_9, window_bounds = array<i64: 32, 32>}, {pipeline_mode = #tpu.pipeline_mode<synchronous>, transform_indices = @transform_10, window_bounds = array<i64: 1, 32>}, {pipeline_mode = #tpu.pipeline_mode<synchronous>, transform_indices = @transform_11, window_bounds = array<i64: 32, 32>}, {pipeline_mode = #tpu.pipeline_mode<synchronous>, transform_indices = @transform_12, window_bounds = array<i64: 1, 32>}, {pipeline_mode = #tpu.pipeline_mode<synchronous>, transform_indices = @transform_13, window_bounds = array<i64: 32, 32>}, {pipeline_mode = #tpu.pipeline_mode<synchronous>, transform_indices = @transform_14, window_bounds = array<i64: 1, 32>}, {pipeline_mode = #tpu.pipeline_mode<synchronous>, transform_indices = @transform_15, window_bounds = array<i64: 16, 32>}]} {
    %c0 = arith.constant 0 : index
    %c0_0 = arith.constant 0 : index
    %0 = vector.load %arg1[%c0, %c0_0] : memref<16x32xf32, #tpu.memory_space<vmem>>, vector<16x32xf32>
    %c0_1 = arith.constant 0 : index
    %c0_2 = arith.constant 0 : index
    %1 = vector.load %arg2[%c0_1, %c0_2] : memref<16x16xf32, #tpu.memory_space<vmem>>, vector<16x16xf32>
    %c0_3 = arith.constant 0 : index
    %c0_4 = arith.constant 0 : index
    %2 = vector.load %arg3[%c0_3, %c0_4] : memref<16x16xf32, #tpu.memory_space<vmem>>, vector<16x16xf32>
    %3 = arith.truncf %0 : vector<16x32xf32> to vector<16x32xbf16>
    %c0_5 = arith.constant 0 : index
    %c0_6 = arith.constant 0 : index
    %4 = vector.load %arg4[%c0_5, %c0_6] : memref<32x96xbf16, #tpu.memory_space<vmem>>, vector<32x96xbf16>
    %cst = arith.constant dense<0.000000e+00> : vector<16x96xf32>
    %5 = tpu.matmul %3, %4, %cst {dimension_numbers = #tpu.dot_dimension_numbers<[1], [0], [0], [1], [0, 0, 1, 1], [], []>} : vector<16x32xbf16>, vector<32x96xbf16>, vector<16x96xf32> -> vector<16x96xf32>
    %c0_7 = arith.constant 0 : index
    %c0_8 = arith.constant 0 : index
    %6 = vector.load %arg5[%c0_7, %c0_8] : memref<1x96xf32, #tpu.memory_space<vmem>>, vector<1x96xf32>
    %7 = vector.broadcast %6 : vector<1x96xf32> to vector<16x96xf32>
    %8 = arith.addf %5, %7 : vector<16x96xf32>
    %9 = vector.extract_strided_slice %8 {offsets = [0, 0], sizes = [16, 32], strides = [1, 1]} : vector<16x96xf32> to vector<16x32xf32>
    %cst_9 = arith.constant 0.353553385 : f32
    %10 = vector.broadcast %cst_9 : f32 to vector<16x32xf32>
    %11 = arith.mulf %9, %10 : vector<16x32xf32>
    %12 = arith.truncf %11 : vector<16x32xf32> to vector<16x32xbf16>
    %13 = vector.extract_strided_slice %8 {offsets = [0, 32], sizes = [16, 32], strides = [1, 1]} : vector<16x96xf32> to vector<16x32xf32>
    %14 = arith.truncf %13 : vector<16x32xf32> to vector<16x32xbf16>
    %15 = vector.extract_strided_slice %8 {offsets = [0, 64], sizes = [16, 32], strides = [1, 1]} : vector<16x96xf32> to vector<16x32xf32>
    %16 = arith.truncf %15 : vector<16x32xf32> to vector<16x32xbf16>
    %c0_10 = arith.constant 0 : index
    %c0_11 = arith.constant 0 : index
    %17 = vector.load %arg6[%c0_10, %c0_11] : memref<32x32xbf16, #tpu.memory_space<vmem>>, vector<32x32xbf16>
    %cst_12 = arith.constant 0.000000e+00 : f32
    %18 = vector.broadcast %cst_12 : f32 to vector<16x32xf32>
    %19 = vector.extract_strided_slice %12 {offsets = [0, 0], sizes = [16, 8], strides = [1, 1]} : vector<16x32xbf16> to vector<16x8xbf16>
    %20 = vector.extract_strided_slice %14 {offsets = [0, 0], sizes = [16, 8], strides = [1, 1]} : vector<16x32xbf16> to vector<16x8xbf16>
    %21 = vector.extract_strided_slice %16 {offsets = [0, 0], sizes = [16, 8], strides = [1, 1]} : vector<16x32xbf16> to vector<16x8xbf16>
    %cst_13 = arith.constant dense<0.000000e+00> : vector<16x16xf32>
    %22 = tpu.matmul %19, %20, %cst_13 {dimension_numbers = #tpu.dot_dimension_numbers<[1], [1], [0], [0], [0, 0, 1, 0], [], []>} : vector<16x8xbf16>, vector<16x8xbf16>, vector<16x16xf32> -> vector<16x16xf32>
    %23 = arith.addf %22, %1 : vector<16x16xf32>
    %cst_14 = arith.constant dense<0xFF800000> : vector<16xf32>
    %24 = vector.multi_reduction <maximumf>, %23, %cst_14 [1] : vector<16x16xf32> to vector<16xf32>
    %25 = vector.shape_cast %24 : vector<16xf32> to vector<16x1xf32>
    %26 = vector.broadcast %25 : vector<16x1xf32> to vector<16x16xf32>
    %27 = arith.subf %23, %26 : vector<16x16xf32>
    %28 = math.exp %27 : vector<16x16xf32>
    %cst_15 = arith.constant dense<0.000000e+00> : vector<16xf32>
    %29 = vector.multi_reduction <add>, %28, %cst_15 [1] : vector<16x16xf32> to vector<16xf32>
    %30 = vector.shape_cast %29 : vector<16xf32> to vector<16x1xf32>
    %31 = tpu.reciprocal %30 {approx = true} : vector<16x1xf32> -> vector<16x1xf32>
    %32 = vector.broadcast %31 : vector<16x1xf32> to vector<16x16xf32>
    %33 = arith.mulf %28, %32 : vector<16x16xf32>
    %34 = arith.truncf %33 : vector<16x16xf32> to vector<16x16xbf16>
    %cst_16 = arith.constant dense<0.000000e+00> : vector<16x8xf32>
    %35 = tpu.matmul %34, %21, %cst_16 {dimension_numbers = #tpu.dot_dimension_numbers<[1], [0], [0], [1], [0, 0, 1, 1], [], []>} : vector<16x16xbf16>, vector<16x8xbf16>, vector<16x8xf32> -> vector<16x8xf32>
    %36 = arith.truncf %35 : vector<16x8xf32> to vector<16x8xbf16>
    %37 = vector.extract_strided_slice %17 {offsets = [0, 0], sizes = [8, 32], strides = [1, 1]} : vector<32x32xbf16> to vector<8x32xbf16>
    %cst_17 = arith.constant dense<0.000000e+00> : vector<16x32xf32>
    %38 = tpu.matmul %36, %37, %cst_17 {dimension_numbers = #tpu.dot_dimension_numbers<[1], [0], [0], [1], [0, 0, 1, 1], [], []>} : vector<16x8xbf16>, vector<8x32xbf16>, vector<16x32xf32> -> vector<16x32xf32>
    %39 = arith.addf %18, %38 : vector<16x32xf32>
    %40 = vector.extract_strided_slice %12 {offsets = [0, 8], sizes = [16, 8], strides = [1, 1]} : vector<16x32xbf16> to vector<16x8xbf16>
    %41 = vector.extract_strided_slice %14 {offsets = [0, 8], sizes = [16, 8], strides = [1, 1]} : vector<16x32xbf16> to vector<16x8xbf16>
    %42 = vector.extract_strided_slice %16 {offsets = [0, 8], sizes = [16, 8], strides = [1, 1]} : vector<16x32xbf16> to vector<16x8xbf16>
    %cst_18 = arith.constant dense<0.000000e+00> : vector<16x16xf32>
    %43 = tpu.matmul %40, %41, %cst_18 {dimension_numbers = #tpu.dot_dimension_numbers<[1], [1], [0], [0], [0, 0, 1, 0], [], []>} : vector<16x8xbf16>, vector<16x8xbf16>, vector<16x16xf32> -> vector<16x16xf32>
    %44 = arith.addf %43, %1 : vector<16x16xf32>
    %cst_19 = arith.constant dense<0xFF800000> : vector<16xf32>
    %45 = vector.multi_reduction <maximumf>, %44, %cst_19 [1] : vector<16x16xf32> to vector<16xf32>
    %46 = vector.shape_cast %45 : vector<16xf32> to vector<16x1xf32>
    %47 = vector.broadcast %46 : vector<16x1xf32> to vector<16x16xf32>
    %48 = arith.subf %44, %47 : vector<16x16xf32>
    %49 = math.exp %48 : vector<16x16xf32>
    %cst_20 = arith.constant dense<0.000000e+00> : vector<16xf32>
    %50 = vector.multi_reduction <add>, %49, %cst_20 [1] : vector<16x16xf32> to vector<16xf32>
    %51 = vector.shape_cast %50 : vector<16xf32> to vector<16x1xf32>
    %52 = tpu.reciprocal %51 {approx = true} : vector<16x1xf32> -> vector<16x1xf32>
    %53 = vector.broadcast %52 : vector<16x1xf32> to vector<16x16xf32>
    %54 = arith.mulf %49, %53 : vector<16x16xf32>
    %55 = arith.truncf %54 : vector<16x16xf32> to vector<16x16xbf16>
    %cst_21 = arith.constant dense<0.000000e+00> : vector<16x8xf32>
    %56 = tpu.matmul %55, %42, %cst_21 {dimension_numbers = #tpu.dot_dimension_numbers<[1], [0], [0], [1], [0, 0, 1, 1], [], []>} : vector<16x16xbf16>, vector<16x8xbf16>, vector<16x8xf32> -> vector<16x8xf32>
    %57 = arith.truncf %56 : vector<16x8xf32> to vector<16x8xbf16>
    %58 = vector.extract_strided_slice %17 {offsets = [8, 0], sizes = [8, 32], strides = [1, 1]} : vector<32x32xbf16> to vector<8x32xbf16>
    %cst_22 = arith.constant dense<0.000000e+00> : vector<16x32xf32>
    %59 = tpu.matmul %57, %58, %cst_22 {dimension_numbers = #tpu.dot_dimension_numbers<[1], [0], [0], [1], [0, 0, 1, 1], [], []>} : vector<16x8xbf16>, vector<8x32xbf16>, vector<16x32xf32> -> vector<16x32xf32>
    %60 = arith.addf %39, %59 : vector<16x32xf32>
    %61 = vector.extract_strided_slice %12 {offsets = [0, 16], sizes = [16, 8], strides = [1, 1]} : vector<16x32xbf16> to vector<16x8xbf16>
    %62 = vector.extract_strided_slice %14 {offsets = [0, 16], sizes = [16, 8], strides = [1, 1]} : vector<16x32xbf16> to vector<16x8xbf16>
    %63 = vector.extract_strided_slice %16 {offsets = [0, 16], sizes = [16, 8], strides = [1, 1]} : vector<16x32xbf16> to vector<16x8xbf16>
    %cst_23 = arith.constant dense<0.000000e+00> : vector<16x16xf32>
    %64 = tpu.matmul %61, %62, %cst_23 {dimension_numbers = #tpu.dot_dimension_numbers<[1], [1], [0], [0], [0, 0, 1, 0], [], []>} : vector<16x8xbf16>, vector<16x8xbf16>, vector<16x16xf32> -> vector<16x16xf32>
    %65 = arith.addf %64, %1 : vector<16x16xf32>
    %cst_24 = arith.constant dense<0xFF800000> : vector<16xf32>
    %66 = vector.multi_reduction <maximumf>, %65, %cst_24 [1] : vector<16x16xf32> to vector<16xf32>
    %67 = vector.shape_cast %66 : vector<16xf32> to vector<16x1xf32>
    %68 = vector.broadcast %67 : vector<16x1xf32> to vector<16x16xf32>
    %69 = arith.subf %65, %68 : vector<16x16xf32>
    %70 = math.exp %69 : vector<16x16xf32>
    %cst_25 = arith.constant dense<0.000000e+00> : vector<16xf32>
    %71 = vector.multi_reduction <add>, %70, %cst_25 [1] : vector<16x16xf32> to vector<16xf32>
    %72 = vector.shape_cast %71 : vector<16xf32> to vector<16x1xf32>
    %73 = tpu.reciprocal %72 {approx = true} : vector<16x1xf32> -> vector<16x1xf32>
    %74 = vector.broadcast %73 : vector<16x1xf32> to vector<16x16xf32>
    %75 = arith.mulf %70, %74 : vector<16x16xf32>
    %76 = arith.truncf %75 : vector<16x16xf32> to vector<16x16xbf16>
    %cst_26 = arith.constant dense<0.000000e+00> : vector<16x8xf32>
    %77 = tpu.matmul %76, %63, %cst_26 {dimension_numbers = #tpu.dot_dimension_numbers<[1], [0], [0], [1], [0, 0, 1, 1], [], []>} : vector<16x16xbf16>, vector<16x8xbf16>, vector<16x8xf32> -> vector<16x8xf32>
    %78 = arith.truncf %77 : vector<16x8xf32> to vector<16x8xbf16>
    %79 = vector.extract_strided_slice %17 {offsets = [16, 0], sizes = [8, 32], strides = [1, 1]} : vector<32x32xbf16> to vector<8x32xbf16>
    %cst_27 = arith.constant dense<0.000000e+00> : vector<16x32xf32>
    %80 = tpu.matmul %78, %79, %cst_27 {dimension_numbers = #tpu.dot_dimension_numbers<[1], [0], [0], [1], [0, 0, 1, 1], [], []>} : vector<16x8xbf16>, vector<8x32xbf16>, vector<16x32xf32> -> vector<16x32xf32>
    %81 = arith.addf %60, %80 : vector<16x32xf32>
    %82 = vector.extract_strided_slice %12 {offsets = [0, 24], sizes = [16, 8], strides = [1, 1]} : vector<16x32xbf16> to vector<16x8xbf16>
    %83 = vector.extract_strided_slice %14 {offsets = [0, 24], sizes = [16, 8], strides = [1, 1]} : vector<16x32xbf16> to vector<16x8xbf16>
    %84 = vector.extract_strided_slice %16 {offsets = [0, 24], sizes = [16, 8], strides = [1, 1]} : vector<16x32xbf16> to vector<16x8xbf16>
    %cst_28 = arith.constant dense<0.000000e+00> : vector<16x16xf32>
    %85 = tpu.matmul %82, %83, %cst_28 {dimension_numbers = #tpu.dot_dimension_numbers<[1], [1], [0], [0], [0, 0, 1, 0], [], []>} : vector<16x8xbf16>, vector<16x8xbf16>, vector<16x16xf32> -> vector<16x16xf32>
    %86 = arith.addf %85, %1 : vector<16x16xf32>
    %cst_29 = arith.constant dense<0xFF800000> : vector<16xf32>
    %87 = vector.multi_reduction <maximumf>, %86, %cst_29 [1] : vector<16x16xf32> to vector<16xf32>
    %88 = vector.shape_cast %87 : vector<16xf32> to vector<16x1xf32>
    %89 = vector.broadcast %88 : vector<16x1xf32> to vector<16x16xf32>
    %90 = arith.subf %86, %89 : vector<16x16xf32>
    %91 = math.exp %90 : vector<16x16xf32>
    %cst_30 = arith.constant dense<0.000000e+00> : vector<16xf32>
    %92 = vector.multi_reduction <add>, %91, %cst_30 [1] : vector<16x16xf32> to vector<16xf32>
    %93 = vector.shape_cast %92 : vector<16xf32> to vector<16x1xf32>
    %94 = tpu.reciprocal %93 {approx = true} : vector<16x1xf32> -> vector<16x1xf32>
    %95 = vector.broadcast %94 : vector<16x1xf32> to vector<16x16xf32>
    %96 = arith.mulf %91, %95 : vector<16x16xf32>
    %97 = arith.truncf %96 : vector<16x16xf32> to vector<16x16xbf16>
    %cst_31 = arith.constant dense<0.000000e+00> : vector<16x8xf32>
    %98 = tpu.matmul %97, %84, %cst_31 {dimension_numbers = #tpu.dot_dimension_numbers<[1], [0], [0], [1], [0, 0, 1, 1], [], []>} : vector<16x16xbf16>, vector<16x8xbf16>, vector<16x8xf32> -> vector<16x8xf32>
    %99 = arith.truncf %98 : vector<16x8xf32> to vector<16x8xbf16>
    %100 = vector.extract_strided_slice %17 {offsets = [24, 0], sizes = [8, 32], strides = [1, 1]} : vector<32x32xbf16> to vector<8x32xbf16>
    %cst_32 = arith.constant dense<0.000000e+00> : vector<16x32xf32>
    %101 = tpu.matmul %99, %100, %cst_32 {dimension_numbers = #tpu.dot_dimension_numbers<[1], [0], [0], [1], [0, 0, 1, 1], [], []>} : vector<16x8xbf16>, vector<8x32xbf16>, vector<16x32xf32> -> vector<16x32xf32>
    %102 = arith.addf %81, %101 : vector<16x32xf32>
    %c0_33 = arith.constant 0 : index
    %c0_34 = arith.constant 0 : index
    %103 = vector.load %arg7[%c0_33, %c0_34] : memref<1x32xf32, #tpu.memory_space<vmem>>, vector<1x32xf32>
    %104 = vector.broadcast %103 : vector<1x32xf32> to vector<16x32xf32>
    %105 = arith.addf %102, %104 : vector<16x32xf32>
    %106 = arith.addf %0, %105 : vector<16x32xf32>
    %cst_35 = arith.constant dense<0.000000e+00> : vector<16xf32>
    %107 = vector.multi_reduction <add>, %106, %cst_35 [1] : vector<16x32xf32> to vector<16xf32>
    %108 = vector.shape_cast %107 : vector<16xf32> to vector<16x1xf32>
    %cst_36 = arith.constant 3.200000e+01 : f32
    %109 = vector.broadcast %cst_36 : f32 to vector<16x1xf32>
    %110 = arith.divf %108, %109 : vector<16x1xf32>
    %111 = vector.broadcast %110 : vector<16x1xf32> to vector<16x32xf32>
    %112 = arith.subf %106, %111 : vector<16x32xf32>
    %113 = arith.mulf %112, %112 : vector<16x32xf32>
    %cst_37 = arith.constant dense<0.000000e+00> : vector<16xf32>
    %114 = vector.multi_reduction <add>, %113, %cst_37 [1] : vector<16x32xf32> to vector<16xf32>
    %115 = vector.shape_cast %114 : vector<16xf32> to vector<16x1xf32>
    %cst_38 = arith.constant 3.200000e+01 : f32
    %116 = vector.broadcast %cst_38 : f32 to vector<16x1xf32>
    %117 = arith.divf %115, %116 : vector<16x1xf32>
    %cst_39 = arith.constant 9.99999974E-6 : f32
    %118 = vector.broadcast %cst_39 : f32 to vector<16x1xf32>
    %119 = arith.addf %117, %118 : vector<16x1xf32>
    %120 = math.rsqrt %119 : vector<16x1xf32>
    %121 = vector.broadcast %120 : vector<16x1xf32> to vector<16x32xf32>
    %122 = arith.mulf %112, %121 : vector<16x32xf32>
    %123 = arith.truncf %122 : vector<16x32xf32> to vector<16x32xbf16>
    %c0_40 = arith.constant 0 : index
    %c0_41 = arith.constant 0 : index
    %124 = vector.load %arg8[%c0_40, %c0_41] : memref<32x96xbf16, #tpu.memory_space<vmem>>, vector<32x96xbf16>
    %cst_42 = arith.constant dense<0.000000e+00> : vector<16x96xf32>
    %125 = tpu.matmul %123, %124, %cst_42 {dimension_numbers = #tpu.dot_dimension_numbers<[1], [0], [0], [1], [0, 0, 1, 1], [], []>} : vector<16x32xbf16>, vector<32x96xbf16>, vector<16x96xf32> -> vector<16x96xf32>
    %c0_43 = arith.constant 0 : index
    %c0_44 = arith.constant 0 : index
    %126 = vector.load %arg9[%c0_43, %c0_44] : memref<1x96xf32, #tpu.memory_space<vmem>>, vector<1x96xf32>
    %127 = vector.broadcast %126 : vector<1x96xf32> to vector<16x96xf32>
    %128 = arith.addf %125, %127 : vector<16x96xf32>
    %129 = vector.extract_strided_slice %128 {offsets = [0, 0], sizes = [16, 32], strides = [1, 1]} : vector<16x96xf32> to vector<16x32xf32>
    %cst_45 = arith.constant 0.353553385 : f32
    %130 = vector.broadcast %cst_45 : f32 to vector<16x32xf32>
    %131 = arith.mulf %129, %130 : vector<16x32xf32>
    %132 = arith.truncf %131 : vector<16x32xf32> to vector<16x32xbf16>
    %133 = vector.extract_strided_slice %128 {offsets = [0, 32], sizes = [16, 32], strides = [1, 1]} : vector<16x96xf32> to vector<16x32xf32>
    %134 = arith.truncf %133 : vector<16x32xf32> to vector<16x32xbf16>
    %135 = vector.extract_strided_slice %128 {offsets = [0, 64], sizes = [16, 32], strides = [1, 1]} : vector<16x96xf32> to vector<16x32xf32>
    %136 = arith.truncf %135 : vector<16x32xf32> to vector<16x32xbf16>
    %c0_46 = arith.constant 0 : index
    %c0_47 = arith.constant 0 : index
    %137 = vector.load %arg10[%c0_46, %c0_47] : memref<32x32xbf16, #tpu.memory_space<vmem>>, vector<32x32xbf16>
    %cst_48 = arith.constant 0.000000e+00 : f32
    %138 = vector.broadcast %cst_48 : f32 to vector<16x32xf32>
    %139 = vector.extract_strided_slice %132 {offsets = [0, 0], sizes = [16, 8], strides = [1, 1]} : vector<16x32xbf16> to vector<16x8xbf16>
    %140 = vector.extract_strided_slice %134 {offsets = [0, 0], sizes = [16, 8], strides = [1, 1]} : vector<16x32xbf16> to vector<16x8xbf16>
    %141 = vector.extract_strided_slice %136 {offsets = [0, 0], sizes = [16, 8], strides = [1, 1]} : vector<16x32xbf16> to vector<16x8xbf16>
    %cst_49 = arith.constant dense<0.000000e+00> : vector<16x16xf32>
    %142 = tpu.matmul %139, %140, %cst_49 {dimension_numbers = #tpu.dot_dimension_numbers<[1], [1], [0], [0], [0, 0, 1, 0], [], []>} : vector<16x8xbf16>, vector<16x8xbf16>, vector<16x16xf32> -> vector<16x16xf32>
    %143 = arith.addf %142, %2 : vector<16x16xf32>
    %cst_50 = arith.constant dense<0xFF800000> : vector<16xf32>
    %144 = vector.multi_reduction <maximumf>, %143, %cst_50 [1] : vector<16x16xf32> to vector<16xf32>
    %145 = vector.shape_cast %144 : vector<16xf32> to vector<16x1xf32>
    %146 = vector.broadcast %145 : vector<16x1xf32> to vector<16x16xf32>
    %147 = arith.subf %143, %146 : vector<16x16xf32>
    %148 = math.exp %147 : vector<16x16xf32>
    %cst_51 = arith.constant dense<0.000000e+00> : vector<16xf32>
    %149 = vector.multi_reduction <add>, %148, %cst_51 [1] : vector<16x16xf32> to vector<16xf32>
    %150 = vector.shape_cast %149 : vector<16xf32> to vector<16x1xf32>
    %151 = tpu.reciprocal %150 {approx = true} : vector<16x1xf32> -> vector<16x1xf32>
    %152 = vector.broadcast %151 : vector<16x1xf32> to vector<16x16xf32>
    %153 = arith.mulf %148, %152 : vector<16x16xf32>
    %154 = arith.truncf %153 : vector<16x16xf32> to vector<16x16xbf16>
    %cst_52 = arith.constant dense<0.000000e+00> : vector<16x8xf32>
    %155 = tpu.matmul %154, %141, %cst_52 {dimension_numbers = #tpu.dot_dimension_numbers<[1], [0], [0], [1], [0, 0, 1, 1], [], []>} : vector<16x16xbf16>, vector<16x8xbf16>, vector<16x8xf32> -> vector<16x8xf32>
    %156 = arith.truncf %155 : vector<16x8xf32> to vector<16x8xbf16>
    %157 = vector.extract_strided_slice %137 {offsets = [0, 0], sizes = [8, 32], strides = [1, 1]} : vector<32x32xbf16> to vector<8x32xbf16>
    %cst_53 = arith.constant dense<0.000000e+00> : vector<16x32xf32>
    %158 = tpu.matmul %156, %157, %cst_53 {dimension_numbers = #tpu.dot_dimension_numbers<[1], [0], [0], [1], [0, 0, 1, 1], [], []>} : vector<16x8xbf16>, vector<8x32xbf16>, vector<16x32xf32> -> vector<16x32xf32>
    %159 = arith.addf %138, %158 : vector<16x32xf32>
    %160 = vector.extract_strided_slice %132 {offsets = [0, 8], sizes = [16, 8], strides = [1, 1]} : vector<16x32xbf16> to vector<16x8xbf16>
    %161 = vector.extract_strided_slice %134 {offsets = [0, 8], sizes = [16, 8], strides = [1, 1]} : vector<16x32xbf16> to vector<16x8xbf16>
    %162 = vector.extract_strided_slice %136 {offsets = [0, 8], sizes = [16, 8], strides = [1, 1]} : vector<16x32xbf16> to vector<16x8xbf16>
    %cst_54 = arith.constant dense<0.000000e+00> : vector<16x16xf32>
    %163 = tpu.matmul %160, %161, %cst_54 {dimension_numbers = #tpu.dot_dimension_numbers<[1], [1], [0], [0], [0, 0, 1, 0], [], []>} : vector<16x8xbf16>, vector<16x8xbf16>, vector<16x16xf32> -> vector<16x16xf32>
    %164 = arith.addf %163, %2 : vector<16x16xf32>
    %cst_55 = arith.constant dense<0xFF800000> : vector<16xf32>
    %165 = vector.multi_reduction <maximumf>, %164, %cst_55 [1] : vector<16x16xf32> to vector<16xf32>
    %166 = vector.shape_cast %165 : vector<16xf32> to vector<16x1xf32>
    %167 = vector.broadcast %166 : vector<16x1xf32> to vector<16x16xf32>
    %168 = arith.subf %164, %167 : vector<16x16xf32>
    %169 = math.exp %168 : vector<16x16xf32>
    %cst_56 = arith.constant dense<0.000000e+00> : vector<16xf32>
    %170 = vector.multi_reduction <add>, %169, %cst_56 [1] : vector<16x16xf32> to vector<16xf32>
    %171 = vector.shape_cast %170 : vector<16xf32> to vector<16x1xf32>
    %172 = tpu.reciprocal %171 {approx = true} : vector<16x1xf32> -> vector<16x1xf32>
    %173 = vector.broadcast %172 : vector<16x1xf32> to vector<16x16xf32>
    %174 = arith.mulf %169, %173 : vector<16x16xf32>
    %175 = arith.truncf %174 : vector<16x16xf32> to vector<16x16xbf16>
    %cst_57 = arith.constant dense<0.000000e+00> : vector<16x8xf32>
    %176 = tpu.matmul %175, %162, %cst_57 {dimension_numbers = #tpu.dot_dimension_numbers<[1], [0], [0], [1], [0, 0, 1, 1], [], []>} : vector<16x16xbf16>, vector<16x8xbf16>, vector<16x8xf32> -> vector<16x8xf32>
    %177 = arith.truncf %176 : vector<16x8xf32> to vector<16x8xbf16>
    %178 = vector.extract_strided_slice %137 {offsets = [8, 0], sizes = [8, 32], strides = [1, 1]} : vector<32x32xbf16> to vector<8x32xbf16>
    %cst_58 = arith.constant dense<0.000000e+00> : vector<16x32xf32>
    %179 = tpu.matmul %177, %178, %cst_58 {dimension_numbers = #tpu.dot_dimension_numbers<[1], [0], [0], [1], [0, 0, 1, 1], [], []>} : vector<16x8xbf16>, vector<8x32xbf16>, vector<16x32xf32> -> vector<16x32xf32>
    %180 = arith.addf %159, %179 : vector<16x32xf32>
    %181 = vector.extract_strided_slice %132 {offsets = [0, 16], sizes = [16, 8], strides = [1, 1]} : vector<16x32xbf16> to vector<16x8xbf16>
    %182 = vector.extract_strided_slice %134 {offsets = [0, 16], sizes = [16, 8], strides = [1, 1]} : vector<16x32xbf16> to vector<16x8xbf16>
    %183 = vector.extract_strided_slice %136 {offsets = [0, 16], sizes = [16, 8], strides = [1, 1]} : vector<16x32xbf16> to vector<16x8xbf16>
    %cst_59 = arith.constant dense<0.000000e+00> : vector<16x16xf32>
    %184 = tpu.matmul %181, %182, %cst_59 {dimension_numbers = #tpu.dot_dimension_numbers<[1], [1], [0], [0], [0, 0, 1, 0], [], []>} : vector<16x8xbf16>, vector<16x8xbf16>, vector<16x16xf32> -> vector<16x16xf32>
    %185 = arith.addf %184, %2 : vector<16x16xf32>
    %cst_60 = arith.constant dense<0xFF800000> : vector<16xf32>
    %186 = vector.multi_reduction <maximumf>, %185, %cst_60 [1] : vector<16x16xf32> to vector<16xf32>
    %187 = vector.shape_cast %186 : vector<16xf32> to vector<16x1xf32>
    %188 = vector.broadcast %187 : vector<16x1xf32> to vector<16x16xf32>
    %189 = arith.subf %185, %188 : vector<16x16xf32>
    %190 = math.exp %189 : vector<16x16xf32>
    %cst_61 = arith.constant dense<0.000000e+00> : vector<16xf32>
    %191 = vector.multi_reduction <add>, %190, %cst_61 [1] : vector<16x16xf32> to vector<16xf32>
    %192 = vector.shape_cast %191 : vector<16xf32> to vector<16x1xf32>
    %193 = tpu.reciprocal %192 {approx = true} : vector<16x1xf32> -> vector<16x1xf32>
    %194 = vector.broadcast %193 : vector<16x1xf32> to vector<16x16xf32>
    %195 = arith.mulf %190, %194 : vector<16x16xf32>
    %196 = arith.truncf %195 : vector<16x16xf32> to vector<16x16xbf16>
    %cst_62 = arith.constant dense<0.000000e+00> : vector<16x8xf32>
    %197 = tpu.matmul %196, %183, %cst_62 {dimension_numbers = #tpu.dot_dimension_numbers<[1], [0], [0], [1], [0, 0, 1, 1], [], []>} : vector<16x16xbf16>, vector<16x8xbf16>, vector<16x8xf32> -> vector<16x8xf32>
    %198 = arith.truncf %197 : vector<16x8xf32> to vector<16x8xbf16>
    %199 = vector.extract_strided_slice %137 {offsets = [16, 0], sizes = [8, 32], strides = [1, 1]} : vector<32x32xbf16> to vector<8x32xbf16>
    %cst_63 = arith.constant dense<0.000000e+00> : vector<16x32xf32>
    %200 = tpu.matmul %198, %199, %cst_63 {dimension_numbers = #tpu.dot_dimension_numbers<[1], [0], [0], [1], [0, 0, 1, 1], [], []>} : vector<16x8xbf16>, vector<8x32xbf16>, vector<16x32xf32> -> vector<16x32xf32>
    %201 = arith.addf %180, %200 : vector<16x32xf32>
    %202 = vector.extract_strided_slice %132 {offsets = [0, 24], sizes = [16, 8], strides = [1, 1]} : vector<16x32xbf16> to vector<16x8xbf16>
    %203 = vector.extract_strided_slice %134 {offsets = [0, 24], sizes = [16, 8], strides = [1, 1]} : vector<16x32xbf16> to vector<16x8xbf16>
    %204 = vector.extract_strided_slice %136 {offsets = [0, 24], sizes = [16, 8], strides = [1, 1]} : vector<16x32xbf16> to vector<16x8xbf16>
    %cst_64 = arith.constant dense<0.000000e+00> : vector<16x16xf32>
    %205 = tpu.matmul %202, %203, %cst_64 {dimension_numbers = #tpu.dot_dimension_numbers<[1], [1], [0], [0], [0, 0, 1, 0], [], []>} : vector<16x8xbf16>, vector<16x8xbf16>, vector<16x16xf32> -> vector<16x16xf32>
    %206 = arith.addf %205, %2 : vector<16x16xf32>
    %cst_65 = arith.constant dense<0xFF800000> : vector<16xf32>
    %207 = vector.multi_reduction <maximumf>, %206, %cst_65 [1] : vector<16x16xf32> to vector<16xf32>
    %208 = vector.shape_cast %207 : vector<16xf32> to vector<16x1xf32>
    %209 = vector.broadcast %208 : vector<16x1xf32> to vector<16x16xf32>
    %210 = arith.subf %206, %209 : vector<16x16xf32>
    %211 = math.exp %210 : vector<16x16xf32>
    %cst_66 = arith.constant dense<0.000000e+00> : vector<16xf32>
    %212 = vector.multi_reduction <add>, %211, %cst_66 [1] : vector<16x16xf32> to vector<16xf32>
    %213 = vector.shape_cast %212 : vector<16xf32> to vector<16x1xf32>
    %214 = tpu.reciprocal %213 {approx = true} : vector<16x1xf32> -> vector<16x1xf32>
    %215 = vector.broadcast %214 : vector<16x1xf32> to vector<16x16xf32>
    %216 = arith.mulf %211, %215 : vector<16x16xf32>
    %217 = arith.truncf %216 : vector<16x16xf32> to vector<16x16xbf16>
    %cst_67 = arith.constant dense<0.000000e+00> : vector<16x8xf32>
    %218 = tpu.matmul %217, %204, %cst_67 {dimension_numbers = #tpu.dot_dimension_numbers<[1], [0], [0], [1], [0, 0, 1, 1], [], []>} : vector<16x16xbf16>, vector<16x8xbf16>, vector<16x8xf32> -> vector<16x8xf32>
    %219 = arith.truncf %218 : vector<16x8xf32> to vector<16x8xbf16>
    %220 = vector.extract_strided_slice %137 {offsets = [24, 0], sizes = [8, 32], strides = [1, 1]} : vector<32x32xbf16> to vector<8x32xbf16>
    %cst_68 = arith.constant dense<0.000000e+00> : vector<16x32xf32>
    %221 = tpu.matmul %219, %220, %cst_68 {dimension_numbers = #tpu.dot_dimension_numbers<[1], [0], [0], [1], [0, 0, 1, 1], [], []>} : vector<16x8xbf16>, vector<8x32xbf16>, vector<16x32xf32> -> vector<16x32xf32>
    %222 = arith.addf %201, %221 : vector<16x32xf32>
    %c0_69 = arith.constant 0 : index
    %c0_70 = arith.constant 0 : index
    %223 = vector.load %arg11[%c0_69, %c0_70] : memref<1x32xf32, #tpu.memory_space<vmem>>, vector<1x32xf32>
    %224 = vector.broadcast %223 : vector<1x32xf32> to vector<16x32xf32>
    %225 = arith.addf %222, %224 : vector<16x32xf32>
    %226 = arith.addf %122, %225 : vector<16x32xf32>
    %cst_71 = arith.constant dense<0.000000e+00> : vector<16xf32>
    %227 = vector.multi_reduction <add>, %226, %cst_71 [1] : vector<16x32xf32> to vector<16xf32>
    %228 = vector.shape_cast %227 : vector<16xf32> to vector<16x1xf32>
    %cst_72 = arith.constant 3.200000e+01 : f32
    %229 = vector.broadcast %cst_72 : f32 to vector<16x1xf32>
    %230 = arith.divf %228, %229 : vector<16x1xf32>
    %231 = vector.broadcast %230 : vector<16x1xf32> to vector<16x32xf32>
    %232 = arith.subf %226, %231 : vector<16x32xf32>
    %233 = arith.mulf %232, %232 : vector<16x32xf32>
    %cst_73 = arith.constant dense<0.000000e+00> : vector<16xf32>
    %234 = vector.multi_reduction <add>, %233, %cst_73 [1] : vector<16x32xf32> to vector<16xf32>
    %235 = vector.shape_cast %234 : vector<16xf32> to vector<16x1xf32>
    %cst_74 = arith.constant 3.200000e+01 : f32
    %236 = vector.broadcast %cst_74 : f32 to vector<16x1xf32>
    %237 = arith.divf %235, %236 : vector<16x1xf32>
    %cst_75 = arith.constant 9.99999974E-6 : f32
    %238 = vector.broadcast %cst_75 : f32 to vector<16x1xf32>
    %239 = arith.addf %237, %238 : vector<16x1xf32>
    %240 = math.rsqrt %239 : vector<16x1xf32>
    %241 = vector.broadcast %240 : vector<16x1xf32> to vector<16x32xf32>
    %242 = arith.mulf %232, %241 : vector<16x32xf32>
    %243 = arith.truncf %242 : vector<16x32xf32> to vector<16x32xbf16>
    %c0_76 = arith.constant 0 : index
    %c0_77 = arith.constant 0 : index
    %244 = vector.load %arg12[%c0_76, %c0_77] : memref<32x32xbf16, #tpu.memory_space<vmem>>, vector<32x32xbf16>
    %cst_78 = arith.constant dense<0.000000e+00> : vector<16x32xf32>
    %245 = tpu.matmul %243, %244, %cst_78 {dimension_numbers = #tpu.dot_dimension_numbers<[1], [0], [0], [1], [0, 0, 1, 1], [], []>} : vector<16x32xbf16>, vector<32x32xbf16>, vector<16x32xf32> -> vector<16x32xf32>
    %c0_79 = arith.constant 0 : index
    %c0_80 = arith.constant 0 : index
    %246 = vector.load %arg13[%c0_79, %c0_80] : memref<1x32xf32, #tpu.memory_space<vmem>>, vector<1x32xf32>
    %247 = vector.broadcast %246 : vector<1x32xf32> to vector<16x32xf32>
    %248 = arith.addf %245, %247 : vector<16x32xf32>
    %cst_81 = arith.constant 0.000000e+00 : f32
    %249 = vector.broadcast %cst_81 : f32 to vector<16x32xf32>
    %250 = arith.cmpf oge, %248, %249 : vector<16x32xf32>
    %cst_82 = arith.constant 0.00999999977 : f32
    %251 = vector.broadcast %cst_82 : f32 to vector<16x32xf32>
    %252 = arith.mulf %251, %248 : vector<16x32xf32>
    %253 = arith.select %250, %248, %252 : vector<16x32xi1>, vector<16x32xf32>
    %254 = arith.truncf %253 : vector<16x32xf32> to vector<16x32xbf16>
    %c0_83 = arith.constant 0 : index
    %c0_84 = arith.constant 0 : index
    %255 = vector.load %arg14[%c0_83, %c0_84] : memref<32x32xbf16, #tpu.memory_space<vmem>>, vector<32x32xbf16>
    %cst_85 = arith.constant dense<0.000000e+00> : vector<16x32xf32>
    %256 = tpu.matmul %254, %255, %cst_85 {dimension_numbers = #tpu.dot_dimension_numbers<[1], [0], [0], [1], [0, 0, 1, 1], [], []>} : vector<16x32xbf16>, vector<32x32xbf16>, vector<16x32xf32> -> vector<16x32xf32>
    %c0_86 = arith.constant 0 : index
    %c0_87 = arith.constant 0 : index
    %257 = vector.load %arg15[%c0_86, %c0_87] : memref<1x32xf32, #tpu.memory_space<vmem>>, vector<1x32xf32>
    %258 = vector.broadcast %257 : vector<1x32xf32> to vector<16x32xf32>
    %259 = arith.addf %256, %258 : vector<16x32xf32>
    %260 = arith.addf %242, %259 : vector<16x32xf32>
    %cst_88 = arith.constant dense<0.000000e+00> : vector<16xf32>
    %261 = vector.multi_reduction <add>, %260, %cst_88 [1] : vector<16x32xf32> to vector<16xf32>
    %262 = vector.shape_cast %261 : vector<16xf32> to vector<16x1xf32>
    %cst_89 = arith.constant 3.200000e+01 : f32
    %263 = vector.broadcast %cst_89 : f32 to vector<16x1xf32>
    %264 = arith.divf %262, %263 : vector<16x1xf32>
    %265 = vector.broadcast %264 : vector<16x1xf32> to vector<16x32xf32>
    %266 = arith.subf %260, %265 : vector<16x32xf32>
    %267 = arith.mulf %266, %266 : vector<16x32xf32>
    %cst_90 = arith.constant dense<0.000000e+00> : vector<16xf32>
    %268 = vector.multi_reduction <add>, %267, %cst_90 [1] : vector<16x32xf32> to vector<16xf32>
    %269 = vector.shape_cast %268 : vector<16xf32> to vector<16x1xf32>
    %cst_91 = arith.constant 3.200000e+01 : f32
    %270 = vector.broadcast %cst_91 : f32 to vector<16x1xf32>
    %271 = arith.divf %269, %270 : vector<16x1xf32>
    %cst_92 = arith.constant 9.99999974E-6 : f32
    %272 = vector.broadcast %cst_92 : f32 to vector<16x1xf32>
    %273 = arith.addf %271, %272 : vector<16x1xf32>
    %274 = math.rsqrt %273 : vector<16x1xf32>
    %275 = vector.broadcast %274 : vector<16x1xf32> to vector<16x32xf32>
    %276 = arith.mulf %266, %275 : vector<16x32xf32>
    %c0_93 = arith.constant 0 : index
    %c0_94 = arith.constant 0 : index
    %277 = vector.load %arg16[%c0_93, %c0_94] : memref<16x32xf32, #tpu.memory_space<vmem>>, vector<16x32xf32>
    tpu.vector_store %arg16[%c0_93, %c0_94], %276 {strides = array<i32>} : memref<16x32xf32, #tpu.memory_space<vmem>>, vector<16x32xf32>,
    return
  }
  func.func @transform_0(%arg0: i32) -> (i32, i32) {
    %c0_i32 = arith.constant 0 : i32
    %c0_i32_0 = arith.constant 0 : i32
    %c0_i32_1 = arith.constant 0 : i32
    return %c0_i32, %c0_i32_0 : i32, i32
  }
  func.func @transform_1(%arg0: i32) -> (i32, i32) {
    %c0_i32 = arith.constant 0 : i32
    %c0_i32_0 = arith.constant 0 : i32
    %c0_i32_1 = arith.constant 0 : i32
    return %c0_i32, %c0_i32_0 : i32, i32
  }
  func.func @transform_2(%arg0: i32) -> (i32, i32) {
    %c0_i32 = arith.constant 0 : i32
    %c0_i32_0 = arith.constant 0 : i32
    %c0_i32_1 = arith.constant 0 : i32
    return %c0_i32, %c0_i32_0 : i32, i32
  }
  func.func @transform_3(%arg0: i32) -> (i32, i32) {
    %c0_i32 = arith.constant 0 : i32
    %c0_i32_0 = arith.constant 0 : i32
    %c0_i32_1 = arith.constant 0 : i32
    return %c0_i32, %c0_i32_0 : i32, i32
  }
  func.func @transform_4(%arg0: i32) -> (i32, i32) {
    %c0_i32 = arith.constant 0 : i32
    %c0_i32_0 = arith.constant 0 : i32
    %c0_i32_1 = arith.constant 0 : i32
    return %c0_i32, %c0_i32_0 : i32, i32
  }
  func.func @transform_5(%arg0: i32) -> (i32, i32) {
    %c0_i32 = arith.constant 0 : i32
    %c0_i32_0 = arith.constant 0 : i32
    %c0_i32_1 = arith.constant 0 : i32
    return %c0_i32, %c0_i32_0 : i32, i32
  }
  func.func @transform_6(%arg0: i32) -> (i32, i32) {
    %c0_i32 = arith.constant 0 : i32
    %c0_i32_0 = arith.constant 0 : i32
    %c0_i32_1 = arith.constant 0 : i32
    return %c0_i32, %c0_i32_0 : i32, i32
  }
  func.func @transform_7(%arg0: i32) -> (i32, i32) {
    %c0_i32 = arith.constant 0 : i32
    %c0_i32_0 = arith.constant 0 : i32
    %c0_i32_1 = arith.constant 0 : i32
    return %c0_i32, %c0_i32_0 : i32, i32
  }
  func.func @transform_8(%arg0: i32) -> (i32, i32) {
    %c0_i32 = arith.constant 0 : i32
    %c0_i32_0 = arith.constant 0 : i32
    %c0_i32_1 = arith.constant 0 : i32
    return %c0_i32, %c0_i32_0 : i32, i32
  }
  func.func @transform_9(%arg0: i32) -> (i32, i32) {
    %c0_i32 = arith.constant 0 : i32
    %c0_i32_0 = arith.constant 0 : i32
    %c0_i32_1 = arith.constant 0 : i32
    return %c0_i32, %c0_i32_0 : i32, i32
  }
  func.func @transform_10(%arg0: i32) -> (i32, i32) {
    %c0_i32 = arith.constant 0 : i32
    %c0_i32_0 = arith.constant 0 : i32
    %c0_i32_1 = arith.constant 0 : i32
    return %c0_i32, %c0_i32_0 : i32, i32
  }
  func.func @transform_11(%arg0: i32) -> (i32, i32) {
    %c0_i32 = arith.constant 0 : i32
    %c0_i32_0 = arith.constant 0 : i32
    %c0_i32_1 = arith.constant 0 : i32
    return %c0_i32, %c0_i32_0 : i32, i32
  }
  func.func @transform_12(%arg0: i32) -> (i32, i32) {
    %c0_i32 = arith.constant 0 : i32
    %c0_i32_0 = arith.constant 0 : i32
    %c0_i32_1 = arith.constant 0 : i32
    return %c0_i32, %c0_i32_0 : i32, i32
  }
  func.func @transform_13(%arg0: i32) -> (i32, i32) {
    %c0_i32 = arith.constant 0 : i32
    %c0_i32_0 = arith.constant 0 : i32
    %c0_i32_1 = arith.constant 0 : i32
    return %c0_i32, %c0_i32_0 : i32, i32
  }
  func.func @transform_14(%arg0: i32) -> (i32, i32) {
    %c0_i32 = arith.constant 0 : i32
    %c0_i32_0 = arith.constant 0 : i32
    %c0_i32_1 = arith.constant 0 : i32
    return %c0_i32, %c0_i32_0 : i32, i32
  }
  func.func @transform_15(%arg0: i32) -> (i32, i32) {
    %c0_i32 = arith.constant 0 : i32
    %c0_i32_0 = arith.constant 0 : i32
    %c0_i32_1 = arith.constant 0 : i32
    return %c0_i32, %c0_i32_0 : i32, i32
  }
}

</mosaic_0001>

<bundles_post_ra>
// kernel: tpu_custom_call.1
= control target key start
LH: loop header
LB: loop body
LE: loop exit
PB: predicated region body
PF: predicated region fallthrough
CT: control target
= control target key end

     0   :  { %20 = vsyncpa [#allocation3], 0  ;;  %s3446_s0 = inlined_call_operand.hbm [shape: f32[16,32], index: 0, kind: input, shape index: {}]   ;;  %s3447_s1 = inlined_call_operand.hbm [shape: f32[16,16], index: 1, kind: input, shape index: {}]   ;;  %s3448_s2 = inlined_call_operand.hbm [shape: f32[16,16], index: 2, kind: input, shape index: {}]   ;;  %s3449_s3 = inlined_call_operand.hbm [shape: bf16[32,96], index: 3, kind: input, shape index: {}]   ;;  %s3450_s4 = inlined_call_operand.hbm [shape: f32[1,96], index: 4, kind: input, shape index: {}]   ;;  %s3451_s5 = inlined_call_operand.hbm [shape: bf16[32,32], index: 5, kind: input, shape index: {}]   ;;  %s3452_s6 = inlined_call_operand.hbm [shape: f32[1,32], index: 6, kind: input, shape index: {}]   ;;  %s3453_s7 = inlined_call_operand.hbm [shape: bf16[32,96], index: 7, kind: input, shape index: {}]   ;;  %s3454_s8 = inlined_call_operand.hbm [shape: f32[1,96], index: 8, kind: input, shape index: {}]   ;;  %s3455_s9 = inlined_call_operand.hbm [shape: bf16[32,32], index: 9, kind: input, shape index: {}]   ;;  %s3456_s10 = inlined_call_operand.hbm [shape: f32[1,32], index: 10, kind: input, shape index: {}]   ;;  %s3457_s11 = inlined_call_operand.hbm [shape: bf16[32,32], index: 11, kind: input, shape index: {}]   ;;  %s3458_s12 = inlined_call_operand.hbm [shape: f32[1,32], index: 12, kind: input, shape index: {}]   ;;  %s3459_s13 = inlined_call_operand.hbm [shape: bf16[32,32], index: 13, kind: input, shape index: {}]   ;;  %s3460_s14 = inlined_call_operand.hbm [shape: f32[1,32], index: 14, kind: input, shape index: {}]   ;;  %s3461_s15 = inlined_call_operand.hbm [shape: f32[16,32], index: 15, kind: output, shape index: {}]  }
   0x1   :  { %21 = vsyncpa [#allocation6], 0 }
   0x2   :  { %22 = vsyncpa [#allocation9], 0 }
   0x3   :  { %23 = vsyncpa [#allocation12], 0 }
   0x4   :  { %24 = vsyncpa [#allocation15], 0 }
   0x5   :  { %25 = vsyncpa [#allocation18], 0 }
   0x6   :  { %26 = vsyncpa [#allocation21], 0 }
   0x7   :  { %27 = vsyncpa [#allocation24], 0 }
   0x8   :  { %28 = vsyncpa [#allocation4], 0  ;;  %s2800_s18 = smov [#allocation5]   ;;  %s2801_s20 = smov [#allocation8]  }
   0x9   :  { %s46_s19 = sshll.u32 %s2800_s18, 4  ;;  %s70_s21 = sshll.u32 %s2801_s20, 4  ;;  %s47_s19 = int_to_ptr.vmem [resolvable:$true] %s46_s19  ;;  %s2912_s21 = int_to_ptr.vmem [resolvable:$true] %s70_s21 }
   0xa   :  { %s2430_s24 = scalar_lea.hbm %s3447_s1, 256 }
   0xb   :  { %p2431_p0 = scmp.ne.s32.totalorder %s3447_s1, %s2430_s24  ;;  %p2434_p1 = scmp.lt.u32.totalorder %s2430_s24, %s3447_s1 }
   0xd   :  { %p2436_p2 = pnand %p2434_p1, %p2431_p0 }
   0xf   :  { %2439 = shalt.err (!%p2436_p2)
}
  0x10   :  { %s2440_s29 = scalar_lea.vmem %s47_s19, 256  ;;  %p2445_p4 = scmp.lt.s32.totalorder %s47_s19, %s47_s19 }
  0x11   :  { %p2441_p3 = scmp.ne.s32.totalorder %s47_s19, %s2440_s29  ;;  %p2446_p5 = scmp.lt.s32.totalorder %s2440_s29, %s2440_s29 }
  0x13   :  { %p2447_p6 = por %p2446_p5, %p2445_p4 }
  0x15   :  { %p2448_p7 = pnand %p2447_p6, %p2441_p3 }
  0x17   :  { %2451 = shalt.err (!%p2448_p7)
}
  0x18   :  { %s3462_s30 = smov 128   ;;  %s3464_s16 = smov 8  }
  0x19   :  { %52 = dma.hbm_to_vmem [thread:$0]  %s3447_s1, 256, %s47_s19, [#allocation6], %s3462_s30, %s3462_s30, %s3464_s16  }
  0x1a   :  { %s2452_s23 = scalar_lea.hbm %s3449_s3, 256 }
  0x1b   :  { %p2453_p8 = scmp.ne.s32.totalorder %s3449_s3, %s2452_s23  ;;  %p2456_p9 = scmp.lt.u32.totalorder %s2452_s23, %s3449_s3 }
  0x1d   :  { %p2458_p10 = pnand %p2456_p9, %p2453_p8 }
  0x1f   :  { %2461 = shalt.err (!%p2458_p10)
}
  0x20   :  { %s2462_s28 = scalar_lea.vmem %s2912_s21, 256  ;;  %p2467_p12 = scmp.lt.s32.totalorder %s2912_s21, %s2912_s21 }
  0x21   :  { %p2463_p11 = scmp.ne.s32.totalorder %s2912_s21, %s2462_s28  ;;  %p2468_p13 = scmp.lt.s32.totalorder %s2462_s28, %s2462_s28 }
  0x23   :  { %p2469_p0 = por %p2468_p13, %p2467_p12 }
  0x25   :  { %p2470_p1 = pnand %p2469_p0, %p2463_p11 }
  0x27   :  { %2473 = shalt.err (!%p2470_p1)
}
  0x28   :  { %s2804_s1 = smov 64   ;;  %s2805_s19 = smov 4  }
  0x29   :  { %76 = dma.hbm_to_vmem [thread:$0]  %s3449_s3, 256, %s2912_s21, [#allocation9], %s2804_s1, %s2804_s1, %s2805_s19  }
  0x2a   :  { %s2806_s18 = smov [#allocation11]   ;;  %s2807_s22 = smov [#allocation14]  }
  0x2b   :  { %s92_s20 = sshll.u32 %s2806_s18, 4  ;;  %s114_s23 = sshll.u32 %s2807_s22, 4  ;;  %s93_s20 = int_to_ptr.vmem [resolvable:$true] %s92_s20  ;;  %s2949_s23 = int_to_ptr.vmem [resolvable:$true] %s114_s23 }
  0x2c   :  { %s2474_s26 = scalar_lea.hbm %s3451_s5, 256 }
  0x2d   :  { %p2475_p2 = scmp.ne.s32.totalorder %s3451_s5, %s2474_s26  ;;  %p2478_p3 = scmp.lt.u32.totalorder %s2474_s26, %s3451_s5 }
  0x2f   :  { %p2480_p4 = pnand %p2478_p3, %p2475_p2 }
  0x31   :  { %2483 = shalt.err (!%p2480_p4)
}
  0x32   :  { %s2484_s3 = scalar_lea.vmem %s93_s20, 256  ;;  %p2489_p6 = scmp.lt.s32.totalorder %s93_s20, %s93_s20 }
  0x33   :  { %p2485_p5 = scmp.ne.s32.totalorder %s93_s20, %s2484_s3  ;;  %p2490_p7 = scmp.lt.s32.totalorder %s2484_s3, %s2484_s3 }
  0x35   :  { %p2491_p8 = por %p2490_p7, %p2489_p6 }
  0x37   :  { %p2492_p9 = pnand %p2491_p8, %p2485_p5 }
  0x39   :  { %2495 = shalt.err (!%p2492_p9)
}
  0x3a   :  { %98 = dma.hbm_to_vmem [thread:$0]  %s3451_s5, 256, %s93_s20, [#allocation12], %s2804_s1, %s2804_s1, %s2805_s19  }
  0x3b   :  { %s2496_s30 = scalar_lea.hbm %s3453_s7, 256 }
  0x3c   :  { %p2497_p10 = scmp.ne.s32.totalorder %s3453_s7, %s2496_s30  ;;  %p2500_p11 = scmp.lt.u32.totalorder %s2496_s30, %s3453_s7 }
  0x3e   :  { %p2502_p12 = pnand %p2500_p11, %p2497_p10 }
  0x40   :  { %2505 = shalt.err (!%p2502_p12)
}
  0x41   :  { %s2506_s26 = scalar_lea.vmem %s2949_s23, 256  ;;  %p2511_p0 = scmp.lt.s32.totalorder %s2949_s23, %s2949_s23 }
  0x42   :  { %p2507_p13 = scmp.ne.s32.totalorder %s2949_s23, %s2506_s26  ;;  %p2512_p1 = scmp.lt.s32.totalorder %s2506_s26, %s2506_s26 }
  0x44   :  { %p2513_p2 = por %p2512_p1, %p2511_p0 }
  0x46   :  { %p2514_p3 = pnand %p2513_p2, %p2507_p13 }
  0x48   :  { %2517 = shalt.err (!%p2514_p3)
}
  0x49   :  { %120 = dma.hbm_to_vmem [thread:$0]  %s3453_s7, 256, %s2949_s23, [#allocation15], %s2804_s1, %s2804_s1, %s2805_s19  }
  0x4a   :  { %s2808_s27 = smov [#allocation17]   ;;  %s2809_s3 = smov [#allocation20]  }
  0x4b   :  { %s136_s28 = sshll.u32 %s2808_s27, 4  ;;  %s158_s21 = sshll.u32 %s2809_s3, 4  ;;  %s137_s28 = int_to_ptr.vmem [resolvable:$true] %s136_s28  ;;  %s2986_s21 = int_to_ptr.vmem [resolvable:$true] %s158_s21 }
  0x4c   :  { %s2518_s18 = scalar_lea.hbm %s3455_s9, 256 }
  0x4d   :  { %p2519_p4 = scmp.ne.s32.totalorder %s3455_s9, %s2518_s18  ;;  %p2522_p5 = scmp.lt.u32.totalorder %s2518_s18, %s3455_s9 }
  0x4f   :  { %p2524_p6 = pnand %p2522_p5, %p2519_p4 }
  0x51   :  { %2527 = shalt.err (!%p2524_p6)
}
  0x52   :  { %s2528_s7 = scalar_lea.vmem %s137_s28, 256  ;;  %p2533_p8 = scmp.lt.s32.totalorder %s137_s28, %s137_s28 }
  0x53   :  { %p2529_p7 = scmp.ne.s32.totalorder %s137_s28, %s2528_s7  ;;  %p2534_p9 = scmp.lt.s32.totalorder %s2528_s7, %s2528_s7 }
  0x55   :  { %p2535_p10 = por %p2534_p9, %p2533_p8 }
  0x57   :  { %p2536_p11 = pnand %p2535_p10, %p2529_p7 }
  0x59   :  { %2539 = shalt.err (!%p2536_p11)
}
  0x5a   :  { %142 = dma.hbm_to_vmem [thread:$0]  %s3455_s9, 256, %s137_s28, [#allocation18], %s2804_s1, %s2804_s1, %s2805_s19  }
  0x5b   :  { %s2540_s20 = scalar_lea.hbm %s3457_s11, 256 }
  0x5c   :  { %p2541_p12 = scmp.ne.s32.totalorder %s3457_s11, %s2540_s20  ;;  %p2544_p13 = scmp.lt.u32.totalorder %s2540_s20, %s3457_s11 }
  0x5e   :  { %p2546_p0 = pnand %p2544_p13, %p2541_p12 }
  0x60   :  { %2549 = shalt.err (!%p2546_p0)
}
  0x61   :  { %s2550_s18 = scalar_lea.vmem %s2986_s21, 256  ;;  %p2555_p2 = scmp.lt.s32.totalorder %s2986_s21, %s2986_s21 }
  0x62   :  { %p2551_p1 = scmp.ne.s32.totalorder %s2986_s21, %s2550_s18  ;;  %p2556_p3 = scmp.lt.s32.totalorder %s2550_s18, %s2550_s18 }
  0x64   :  { %p2557_p4 = por %p2556_p3, %p2555_p2 }
  0x66   :  { %p2558_p5 = pnand %p2557_p4, %p2551_p1 }
  0x68   :  { %2561 = shalt.err (!%p2558_p5)
}
  0x69   :  { %164 = dma.hbm_to_vmem [thread:$0]  %s3457_s11, 256, %s2986_s21, [#allocation21], %s2804_s1, %s2804_s1, %s2805_s19  }
  0x6a   :  { %s2810_s30 = smov [#allocation23]   ;;  %s2811_s22 = smov [#allocation2]  }
  0x6b   :  { %s180_s16 = sshll.u32 %s2810_s30, 4  ;;  %s34_s24 = sshll.u32 %s2811_s22, 4  ;;  %s181_s16 = int_to_ptr.vmem [resolvable:$true] %s180_s16  ;;  %s3023_s24 = int_to_ptr.vmem [resolvable:$true] %s34_s24 }
  0x6c   :  { %s2562_s25 = scalar_lea.hbm %s3459_s13, 256 }
  0x6d   :  { %p2563_p6 = scmp.ne.s32.totalorder %s3459_s13, %s2562_s25  ;;  %p2566_p7 = scmp.lt.u32.totalorder %s2562_s25, %s3459_s13 }
  0x6f   :  { %p2568_p8 = pnand %p2566_p7, %p2563_p6 }
  0x71   :  { %2571 = shalt.err (!%p2568_p8)
}
  0x72   :  { %s2572_s11 = scalar_lea.vmem %s181_s16, 256  ;;  %p2577_p10 = scmp.lt.s32.totalorder %s181_s16, %s181_s16 }
  0x73   :  { %p2573_p9 = scmp.ne.s32.totalorder %s181_s16, %s2572_s11  ;;  %p2578_p11 = scmp.lt.s32.totalorder %s2572_s11, %s2572_s11 }
  0x75   :  { %p2579_p12 = por %p2578_p11, %p2577_p10 }
  0x77   :  { %p2580_p13 = pnand %p2579_p12, %p2573_p9 }
  0x79   :  { %2583 = shalt.err (!%p2580_p13)
}
  0x7a   :  { %186 = dma.hbm_to_vmem [thread:$0]  %s3459_s13, 256, %s181_s16, [#allocation24], %s2804_s1, %s2804_s1, %s2805_s19  }
  0x7b   :  { %s2584_s18 = scalar_lea.hbm %s3446_s0, 256 }
  0x7c   :  { %p2585_p0 = scmp.ne.s32.totalorder %s3446_s0, %s2584_s18  ;;  %p2588_p1 = scmp.lt.u32.totalorder %s2584_s18, %s3446_s0 }
  0x7e   :  { %p2590_p2 = pnand %p2588_p1, %p2585_p0 }
  0x80   :  { %2593 = shalt.err (!%p2590_p2)
}
  0x81   :  { %s2594_s7 = scalar_lea.vmem %s3023_s24, 256  ;;  %p2599_p4 = scmp.lt.s32.totalorder %s3023_s24, %s3023_s24 }
  0x82   :  { %p2595_p3 = scmp.ne.s32.totalorder %s3023_s24, %s2594_s7  ;;  %p2600_p5 = scmp.lt.s32.totalorder %s2594_s7, %s2594_s7 }
  0x84   :  { %p2601_p6 = por %p2600_p5, %p2599_p4 }
  0x86   :  { %p2602_p7 = pnand %p2601_p6, %p2595_p3 }
  0x88   :  { %2605 = shalt.err (!%p2602_p7)
}
  0x89   :  { %s3466_s13 = smov 8   ;;  %s3467_s19 = smov 128  }
  0x8a   :  { %40 = dma.hbm_to_vmem [thread:$0]  %s3446_s0, 256, %s3023_s24, [#allocation3], %s3467_s19, %s3467_s19, %s3466_s13  }
  0x8b   :  { %s2812_s25 = smov [#allocation7]   ;;  %s2813_s5 = smov [#allocation10]  }
  0x8c   :  { %s58_s26 = sshll.u32 %s2812_s25, 4  ;;  %s83_s20 = sshll.u32 %s2813_s5, 4  ;;  %s59_s26 = int_to_ptr.vmem [resolvable:$true] %s58_s26  ;;  %s84_s20 = int_to_ptr.vmem [resolvable:$true] %s83_s20 }
  0x8d   :  { %s2606_s21 = scalar_lea.hbm %s3448_s2, 256 }
  0x8e   :  { %p2607_p8 = scmp.ne.s32.totalorder %s3448_s2, %s2606_s21  ;;  %p2610_p9 = scmp.lt.u32.totalorder %s2606_s21, %s3448_s2 }
  0x90   :  { %p2612_p10 = pnand %p2610_p9, %p2607_p8 }
  0x92   :  { %2615 = shalt.err (!%p2612_p10)
}
  0x93   :  { %s2616_s0 = scalar_lea.vmem %s59_s26, 256  ;;  %p2621_p12 = scmp.lt.s32.totalorder %s59_s26, %s59_s26 }
  0x94   :  { %p2617_p11 = scmp.ne.s32.totalorder %s59_s26, %s2616_s0  ;;  %p2622_p13 = scmp.lt.s32.totalorder %s2616_s0, %s2616_s0 }
  0x96   :  { %p2623_p0 = por %p2622_p13, %p2621_p12 }
  0x98   :  { %p2624_p1 = pnand %p2623_p0, %p2617_p11 }
  0x9a   :  { %2627 = shalt.err (!%p2624_p1)
}
  0x9b   :  { %64 = dma.hbm_to_vmem [thread:$0]  %s3448_s2, 256, %s59_s26, [#allocation6], %s3467_s19, %s3467_s19, %s3466_s13  }
  0x9c   :  { %s2628_s22 = scalar_lea.hbm %s3450_s4, 16 }
  0x9d   :  { %p2629_p2 = scmp.ne.s32.totalorder %s3450_s4, %s2628_s22  ;;  %p2632_p3 = scmp.lt.u32.totalorder %s2628_s22, %s3450_s4 }
  0x9f   :  { %p2634_p4 = pnand %p2632_p3, %p2629_p2 }
  0xa1   :  { %2637 = shalt.err (!%p2634_p4)
}
  0xa2   :  { %s2638_s5 = scalar_lea.vmem %s84_s20, 16  ;;  %s2642_s27 = scalar_lea.vmem %s84_s20, 32 }
  0xa3   :  { %p2639_p5 = scmp.ne.s32.totalorder %s84_s20, %s2638_s5  ;;  %p2643_p6 = scmp.lt.s32.totalorder %s84_s20, %s84_s20 }
  0xa4   :  { %p2644_p7 = scmp.lt.s32.totalorder %s2642_s27, %s2638_s5 }
  0xa6   :  { %p2645_p8 = por %p2644_p7, %p2643_p6 }
  0xa8   :  { %p2646_p9 = pnand %p2645_p8, %p2639_p5 }
  0xaa   :  { %2649 = shalt.err (!%p2646_p9)
}
  0xab   :  { %86 = dma.hbm_to_vmem [thread:$0]  %s3450_s4, 16, %s84_s20, [#allocation9]  }
  0xac   :  { %s2814_s11 = smov [#allocation13]   ;;  %s2815_s3 = smov [#allocation16]  }
  0xad   :  { %s105_s21 = sshll.u32 %s2814_s11, 4  ;;  %s127_s29 = sshll.u32 %s2815_s3, 4  ;;  %s106_s21 = int_to_ptr.vmem [resolvable:$true] %s105_s21  ;;  %s128_s29 = int_to_ptr.vmem [resolvable:$true] %s127_s29 }
  0xae   :  { %s2650_s0 = scalar_lea.hbm %s3452_s6, 16 }
  0xaf   :  { %p2651_p10 = scmp.ne.s32.totalorder %s3452_s6, %s2650_s0  ;;  %p2654_p11 = scmp.lt.u32.totalorder %s2650_s0, %s3452_s6 }
  0xb1   :  { %p2656_p12 = pnand %p2654_p11, %p2651_p10 }
  0xb3   :  { %2659 = shalt.err (!%p2656_p12)
}
  0xb4   :  { %s2660_s4 = scalar_lea.vmem %s106_s21, 16  ;;  %s2664_s20 = scalar_lea.vmem %s106_s21, 32 }
  0xb5   :  { %p2661_p13 = scmp.ne.s32.totalorder %s106_s21, %s2660_s4  ;;  %p2665_p0 = scmp.lt.s32.totalorder %s106_s21, %s106_s21 }
  0xb6   :  { %p2666_p1 = scmp.lt.s32.totalorder %s2664_s20, %s2660_s4 }
  0xb8   :  { %p2667_p2 = por %p2666_p1, %p2665_p0 }
  0xba   :  { %p2668_p3 = pnand %p2667_p2, %p2661_p13 }
  0xbc   :  { %2671 = shalt.err (!%p2668_p3)
}
  0xbd   :  { %108 = dma.hbm_to_vmem [thread:$0]  %s3452_s6, 16, %s106_s21, [#allocation12]  }
  0xbe   :  { %s2672_s25 = scalar_lea.hbm %s3454_s8, 16 }
  0xbf   :  { %p2673_p4 = scmp.ne.s32.totalorder %s3454_s8, %s2672_s25  ;;  %p2676_p5 = scmp.lt.u32.totalorder %s2672_s25, %s3454_s8 }
  0xc1   :  { %p2678_p6 = pnand %p2676_p5, %p2673_p4 }
  0xc3   :  { %2681 = shalt.err (!%p2678_p6)
}
  0xc4   :  { %s2682_s11 = scalar_lea.vmem %s128_s29, 16  ;;  %s2686_s3 = scalar_lea.vmem %s128_s29, 32 }
  0xc5   :  { %p2683_p7 = scmp.ne.s32.totalorder %s128_s29, %s2682_s11  ;;  %p2687_p8 = scmp.lt.s32.totalorder %s128_s29, %s128_s29 }
  0xc6   :  { %p2688_p9 = scmp.lt.s32.totalorder %s2686_s3, %s2682_s11 }
  0xc8   :  { %p2689_p10 = por %p2688_p9, %p2687_p8 }
  0xca   :  { %p2690_p11 = pnand %p2689_p10, %p2683_p7 }
  0xcc   :  { %2693 = shalt.err (!%p2690_p11)
}
  0xcd   :  { %130 = dma.hbm_to_vmem [thread:$0]  %s3454_s8, 16, %s128_s29, [#allocation15]  }
  0xce   :  { %s2816_s17 = smov [#allocation19]   ;;  %s2817_s0 = smov [#allocation22]  }
  0xcf   :  { %s149_s18 = sshll.u32 %s2816_s17, 4  ;;  %s171_s24 = sshll.u32 %s2817_s0, 4  ;;  %s150_s18 = int_to_ptr.vmem [resolvable:$true] %s149_s18  ;;  %s172_s24 = int_to_ptr.vmem [resolvable:$true] %s171_s24 }
  0xd0   :  { %s2694_s30 = scalar_lea.hbm %s3456_s10, 16 }
  0xd1   :  { %p2695_p12 = scmp.ne.s32.totalorder %s3456_s10, %s2694_s30  ;;  %p2698_p13 = scmp.lt.u32.totalorder %s2694_s30, %s3456_s10 }
  0xd3   :  { %p2700_p0 = pnand %p2698_p13, %p2695_p12 }
  0xd5   :  { %2703 = shalt.err (!%p2700_p0)
}
  0xd6   :  { %s2704_s8 = scalar_lea.vmem %s150_s18, 16  ;;  %s2708_s29 = scalar_lea.vmem %s150_s18, 32 }
  0xd7   :  { %p2705_p1 = scmp.ne.s32.totalorder %s150_s18, %s2704_s8  ;;  %p2709_p2 = scmp.lt.s32.totalorder %s150_s18, %s150_s18 }
  0xd8   :  { %p2710_p3 = scmp.lt.s32.totalorder %s2708_s29, %s2704_s8 }
  0xda   :  { %p2711_p4 = por %p2710_p3, %p2709_p2 }
  0xdc   :  { %p2712_p5 = pnand %p2711_p4, %p2705_p1 }
  0xde   :  { %2715 = shalt.err (!%p2712_p5)
}
  0xdf   :  { %152 = dma.hbm_to_vmem [thread:$0]  %s3456_s10, 16, %s150_s18, [#allocation18]  }
  0xe0   :  { %s2716_s27 = scalar_lea.hbm %s3458_s12, 16 }
  0xe1   :  { %p2717_p6 = scmp.ne.s32.totalorder %s3458_s12, %s2716_s27  ;;  %p2720_p7 = scmp.lt.u32.totalorder %s2716_s27, %s3458_s12 }
  0xe3   :  { %p2722_p8 = pnand %p2720_p7, %p2717_p6 }
  0xe5   :  { %2725 = shalt.err (!%p2722_p8)
}
  0xe6   :  { %s2726_s6 = scalar_lea.vmem %s172_s24, 16  ;;  %s2730_s21 = scalar_lea.vmem %s172_s24, 32 }
  0xe7   :  { %p2727_p9 = scmp.ne.s32.totalorder %s172_s24, %s2726_s6  ;;  %p2731_p10 = scmp.lt.s32.totalorder %s172_s24, %s172_s24 }
  0xe8   :  { %p2732_p11 = scmp.lt.s32.totalorder %s2730_s21, %s2726_s6 }
  0xea   :  { %p2733_p12 = por %p2732_p11, %p2731_p10 }
  0xec   :  { %p2734_p13 = pnand %p2733_p12, %p2727_p9 }
  0xee   :  { %2737 = shalt.err (!%p2734_p13)
}
  0xef   :  { %174 = dma.hbm_to_vmem [thread:$0]  %s3458_s12, 16, %s172_s24, [#allocation21]  }
  0xf0   :  { %s2818_s18 = smov [#allocation25]   ;;  %s2738_s30 = scalar_lea.hbm %s3460_s14, 16 }
  0xf1   :  { %s193_s0 = sshll.u32 %s2818_s18, 4  ;;  %p2739_p0 = scmp.ne.s32.totalorder %s3460_s14, %s2738_s30  ;;  %s194_s0 = int_to_ptr.vmem [resolvable:$true] %s193_s0 }
  0xf2   :  { %p2742_p1 = scmp.lt.u32.totalorder %s2738_s30, %s3460_s14 }
  0xf4   :  { %p2744_p2 = pnand %p2742_p1, %p2739_p0 }
  0xf6   :  { %2747 = shalt.err (!%p2744_p2)
}
  0xf7   :  { %s2748_s8 = scalar_lea.vmem %s194_s0, 16  ;;  %s2752_s12 = scalar_lea.vmem %s194_s0, 32 }
  0xf8   :  { %p2749_p3 = scmp.ne.s32.totalorder %s194_s0, %s2748_s8  ;;  %p2753_p4 = scmp.lt.s32.totalorder %s194_s0, %s194_s0 }
  0xf9   :  { %p2754_p5 = scmp.lt.s32.totalorder %s2752_s12, %s2748_s8 }
  0xfb   :  { %p2755_p6 = por %p2754_p5, %p2753_p4 }
  0xfd   :  { %p2756_p7 = pnand %p2755_p6, %p2749_p3 }
  0xff   :  { %2759 = shalt.err (!%p2756_p7)
}
 0x100   :  { %196 = dma.hbm_to_vmem [thread:$0]  %s3460_s14, 16, %s194_s0, [#allocation24]  }
 0x101   :  { %2782 = dma.done.wait [#allocation3], 256  }
 0x102   :  { %2783 = vsyncadd [#allocation3], 4294967040 }
 0x103   :  { %2784 = dma.done.wait [#allocation6], 512  }
 0x104   :  { %2785 = vsyncadd [#allocation6], 4294966784 }
 0x105   :  { %2786 = dma.done.wait [#allocation9], 272  }
 0x106   :  { %2787 = vsyncadd [#allocation9], 4294967024 }
 0x107   :  { %2788 = dma.done.wait [#allocation12], 272  }
 0x108   :  { %2789 = vsyncadd [#allocation12], 4294967024 }
 0x109   :  { %2790 = dma.done.wait [#allocation15], 272  }
 0x10a   :  { %2791 = vsyncadd [#allocation15], 4294967024 }
 0x10b   :  { %2792 = dma.done.wait [#allocation18], 272  }
 0x10c   :  { %2793 = vsyncadd [#allocation18], 4294967024 }
 0x10d   :  { %2794 = dma.done.wait [#allocation21], 272  }
 0x10e   :  { %2795 = vsyncadd [#allocation21], 4294967024 }
 0x10f   :  { %2796 = dma.done.wait [#allocation24], 272  }
 0x110   :  { %2797 = vsyncadd [#allocation24], 4294967024  ;;  %v2819_v0 = vmov 0.0   ;;  %vm2820_vm0 = vmmov 0   ;;  %v2346_v1 = vld [vmem:[#allocation8] sm:$0xff]   ;;  %v2347_v2 = vld [vmem:[#allocation8 + $0x8] sm:$0xff]  }
 0x111   :  { %2138 = vmatprep.subr.bf16.mxu0 %v2819_v0  ;;  %2142 = vmatprep.mubr.msk.bf16.mxu0 %vm2820_vm0, %v2819_v0  ;;  %v3153_v3 = vld [vmem:[#allocation2] sm:$0xff]  ;;  %v3155_v4 = vld [vmem:[#allocation2 + $0x8] sm:$0xff]  ;;  %vm273_vm1 = vcmask 261120   ;;  %s2821_s14 = smov 96   ;;  %s2822_s16 = smov 120   ;;  %vm329_vm2 = vcmask 64512  }
 0x112   :  { %2146 = vmatprep.subr.bf16.mxu1 %v2819_v0  ;;  %2148 = vmatprep.mubr.msk.bf16.mxu1 %vm2820_vm0, %v2819_v0  ;;  %v249_v5 = vpack.c.bf16 %v3155_v4, %v3153_v3  ;;  %v2036_v6 = vld [vmem:[#allocation10] ss:$0 sm:$0xff]  ;;  %s2823_s23 = smov 88   ;;  %v3185_v22 = vld [vmem:[#allocation5] sm:$0xff]  ;;  %v3187_v24 = vld [vmem:[#allocation5 + $0x8] sm:$0xff]  ;;  %vm377_vm3 = vcmask 130048  }
 0x113   :  { %2139 = vmatpush3.bf16.msra.mxu0 %v2346_v1  ;;  %s2824_s25 = smov 56   ;;  %s2825_s5 = smov 80   ;;  %vm575_vm4 = vcmask 1043456  }
 0x114   :  { %2140 = vmatprep.subr.bf16.mxu0 %v2819_v0  ;;  %s2826_s27 = smov 112   ;;  %s2827_s2 = smov 72  }
 0x115   :  { %s2828_s26 = smov 48   ;;  %s2829_s11 = smov 104  }
 0x116   :  { %s2830_s3 = smov 40  }
 0x117   :  { %2141 = vmatpush3.bf16.msra.mxu0 %v2347_v2 }
 0x118   :  { %2152 = vmatprep.subr.bf16.mxu0 %v2819_v0 }
 0x11a   :  { %2143 = vmatmul.mubr.msk.bf16.vlgmr.msra.gmra.mrb[0].mxu0 %vm273_vm1, %v249_v5 }
 0x11b   :  { %2154 = vmatprep.mubr.msk.bf16.mxu0 %vm2820_vm0, %v2819_v0 }
 0x1ed   :  { %v311_v7 = vpop.f32.mrb[0].mxu0 }
 0x1ee   :  { %v312_v8 = vadd.f32 %v2036_v6, %v311_v7  ;;  %v2144_v9 = vpop.f32.mrb[1].mxu0 }
 0x1ef   :  { %v314_v10 = vpop.f32.mrb[2].mxu0 }
 0x1f0   :  { %v315_v11 = vadd.f32 %v2036_v6, %v314_v10  ;;  %v2145_v12 = vpop.f32.mrb[3].mxu0  ;;  %v318_v13 = vmul.f32 0.35355338, %v312_v8 }
 0x1f2   :  { %v319_v14 = vmul.f32 0.35355338, %v315_v11  ;;  %v3164_v15 = vpack.c.bf16 %v315_v11, %v312_v8 }
 0x1f4   :  { %v3166_v16 = vpack.c.bf16 %v319_v14, %v318_v13  ;;  %327 = vrot.lane.b32.xlu0 %v3164_v15, %s2821_s14 }
 0x1f6   :  { %450 = vrot.lane.b32.xlu1 %v3166_v16, %s2822_s16 }
 0x1f8   :  { %452 = vrot.lane.b32.xlu0 %v3164_v15, %s2823_s23 }
 0x266   :  { %v328_v17 = vpop.permute.xlu0 %327 }
 0x267   :  { %v334_v18 = vsel %vm329_vm2, %v328_v17, 0  ;;  %v322_v17 = vld [vmem:[#allocation11] sm:$0xf] }
 0x268   :  { %2147 = vmatpush3.bf16.xpose.msra.mxu1 %v334_v18  ;;  %v451_v21 = vpop.permute.xlu1 %450  ;;  %v624_v18 = vsel %vm575_vm4, %v322_v17, 0 }
 0x269   :  { %2158 = vmatprep.subr.bf16.mxu1 %v2819_v0 }
 0x26a   :  { %v453_v19 = vpop.permute.xlu0 %452 }
 0x26b   :  { %v458_v20 = vsel %vm329_vm2, %v453_v19, 0  ;;  %v323_v19 = vld [vmem:[#allocation11 + $0x4] sm:$0xf] }
 0x26f   :  { %2149 = vmatmul.mubr.msk.bf16.vlgmr.msra.gmra.mrb[0].mxu1 %vm329_vm2, %v3166_v16 }
 0x270   :  { %2159 = vmatpush3.bf16.xpose.msra.mxu1 %v458_v20  ;;  %2160 = vmatprep.mubr.msk.bf16.mxu1 %vm2820_vm0, %v2819_v0  ;;  %v577_v20 = vsel %vm575_vm4, %v323_v19, 0 }
 0x271   :  { %2170 = vmatprep.subr.bf16.mxu1 %v2819_v0 }
 0x277   :  { %2161 = vmatmul.mubr.msk.bf16.vlgmr.msra.gmra.mrb[4].mxu1 %vm329_vm2, %v451_v21 }
 0x278   :  { %2172 = vmatprep.mubr.msk.bf16.mxu1 %vm2820_vm0, %v2819_v0  ;;  %2171 = vmatpush3.bf16.msra.mxu1 %v577_v20 }
 0x279   :  { %2182 = vmatprep.subr.bf16.mxu1 %v2819_v0 }
 0x342   :  { %v370_v23 = vpop.f32.mrb[0].mxu1 }
 0x343   :  { %v371_v25 = vadd.f32 %v370_v23, %v3185_v22  ;;  %v2150_v26 = vpop.f32.mrb[1].mxu1 }
 0x344   :  { %v373_v27 = vpop.f32.mrb[2].mxu1 }
 0x345   :  { %v374_v28 = vadd.f32 %v373_v27, %v3187_v24  ;;  %v2151_v29 = vpop.f32.mrb[3].mxu1  ;;  %v378_v30 = vsel %vm377_vm3, %v371_v25, -inf }
 0x346   :  { %379 = vmax.xlane.f32.xlu1 %v378_v30 }
 0x347   :  { %v381_v31 = vsel %vm377_vm3, %v374_v28, -inf }
 0x348   :  { %382 = vmax.xlane.f32.xlu0 %v381_v31 }
 0x34a   :  { %v494_v32 = vpop.f32.mrb[4].mxu1 }
 0x34b   :  { %v495_v33 = vadd.f32 %v494_v32, %v3185_v22  ;;  %v2162_v34 = vpop.f32.mrb[5].mxu1 }
 0x34c   :  { %v497_v35 = vpop.f32.mrb[6].mxu1 }
 0x34d   :  { %v498_v36 = vadd.f32 %v497_v35, %v3187_v24  ;;  %v2163_v37 = vpop.f32.mrb[7].mxu1  ;;  %v501_v38 = vsel %vm377_vm3, %v495_v33, -inf }
 0x34e   :  { %502 = vmax.xlane.f32.xlu0 %v501_v38 }
 0x34f   :  { %v504_v39 = vsel %vm377_vm3, %v498_v36, -inf }
 0x350   :  { %505 = vmax.xlane.f32.xlu1 %v504_v39 }
 0x3d3   :  { %v380_v40 = vpop.xlane.xlu1 %379 }
 0x3d4   :  { %v384_v41 = vsub.f32 %v371_v25, %v380_v40 }
 0x3d5   :  { %v383_v42 = vpop.xlane.xlu0 %382 }
 0x3d6   :  { %v386_v43 = vmul.f32 1.442695, %v384_v41  ;;  %v385_v44 = vsub.f32 %v374_v28, %v383_v42 }
 0x3d8   :  { %2354 = vpow2.f32 %v386_v43  ;;  %v388_v45 = vmul.f32 1.442695, %v385_v44 }
 0x3da   :  { %2356 = vpow2.f32 %v388_v45 }
 0x3db   :  { %v503_v46 = vpop.xlane.xlu0 %502 }
 0x3dc   :  { %v507_v47 = vsub.f32 %v495_v33, %v503_v46 }
 0x3dd   :  { %v506_v48 = vpop.xlane.xlu1 %505 }
 0x3de   :  { %v509_v49 = vmul.f32 1.442695, %v507_v47  ;;  %v508_v50 = vsub.f32 %v498_v36, %v506_v48 }
 0x3e0   :  { %2358 = vpow2.f32 %v509_v49  ;;  %v511_v51 = vmul.f32 1.442695, %v508_v50 }
 0x3e2   :  { %v2355_v52 = vpop.eup %2354  ;;  %2360 = vpow2.f32 %v511_v51 }
 0x3e3   :  { %v390_v53 = vsel %vm377_vm3, %v2355_v52, 0.0 }
 0x3e4   :  { %v2357_v54 = vpop.eup %2356  ;;  %391 = vadd.xlane.f32.xlu0 %v390_v53 }
 0x3e5   :  { %v393_v55 = vsel %vm377_vm3, %v2357_v54, 0.0 }
 0x3e6   :  { %394 = vadd.xlane.f32.xlu1 %v393_v55 }
 0x3ea   :  { %v2359_v56 = vpop.eup %2358 }
 0x3eb   :  { %v513_v57 = vsel %vm377_vm3, %v2359_v56, 0.0 }
 0x3ec   :  { %v2361_v58 = vpop.eup %2360  ;;  %514 = vadd.xlane.f32.xlu0 %v513_v57 }
 0x3ed   :  { %v516_v59 = vsel %vm377_vm3, %v2361_v58, 0.0 }
 0x3ee   :  { %517 = vadd.xlane.f32.xlu1 %v516_v59 }
 0x3ff   :  { %524 = vrot.lane.b32.xlu1 %v3164_v15, %s2824_s25 }
 0x402   :  { %401 = vrot.lane.b32.xlu0 %v3164_v15, %s2804_s1 }
 0x403   :  { %669 = vrot.lane.b32.xlu1 %v3164_v15, %s2825_s5 }
 0x406   :  { %667 = vrot.lane.b32.xlu0 %v3166_v16, %s2826_s27 }
 0x471   :  { %v392_v60 = vpop.xlane.xlu0 %391 }
 0x472   :  { %2362 = vrcp.f32 %v392_v60 }
 0x473   :  { %v395_v61 = vpop.xlane.xlu1 %394 }
 0x474   :  { %2364 = vrcp.f32 %v395_v61 }
 0x479   :  { %v515_v62 = vpop.xlane.xlu0 %514 }
 0x47a   :  { %2366 = vrcp.f32 %v515_v62 }
 0x47b   :  { %v518_v63 = vpop.xlane.xlu1 %517 }
 0x47c   :  { %v2363_v1 = vpop.eup %2362  ;;  %2368 = vrcp.f32 %v518_v63 }
 0x47d   :  { %v402_v2 = vpop.permute.xlu0 %401  ;;  %v398_v6 = vmul.f32 %v2363_v1, %v2355_v52 }
 0x47e   :  { %v2365_v5 = vpop.eup %2364  ;;  %2153 = vmatpush3.bf16.msra.mxu0 %v402_v2 }
 0x47f   :  { %v399_v7 = vmul.f32 %v2365_v5, %v2357_v54  ;;  %2164 = vmatprep.subr.bf16.mxu0 %v2819_v0  ;;  %v525_v9 = vpop.permute.xlu1 %524 }
 0x481   :  { %v400_v8 = vpack.c.bf16 %v399_v7, %v398_v6  ;;  %v668_v35 = vpop.permute.xlu0 %667 }
 0x483   :  { %2155 = vmatmul.mubr.msk.bf16.vlgmr.msra.gmra.mrb[4].mxu0 %vm377_vm3, %v400_v8  ;;  %v670_v30 = vpop.permute.xlu1 %669 }
 0x484   :  { %v2367_v10 = vpop.eup %2366  ;;  %2165 = vmatpush3.bf16.msra.mxu0 %v525_v9  ;;  %2166 = vmatprep.mubr.msk.bf16.mxu0 %vm2820_vm0, %v2819_v0  ;;  %v675_v34 = vsel %vm329_vm2, %v670_v30, 0 }
 0x485   :  { %2176 = vmatprep.subr.bf16.mxu0 %v2819_v0  ;;  %v521_v12 = vmul.f32 %v2367_v10, %v2359_v56 }
 0x486   :  { %v2369_v11 = vpop.eup %2368 }
 0x487   :  { %v522_v13 = vmul.f32 %v2369_v11, %v2361_v58 }
 0x489   :  { %v523_v14 = vpack.c.bf16 %v522_v13, %v521_v12  ;;  %v324_v13 = vld [vmem:[#allocation11 + $0x8] sm:$0xf] }
 0x48b   :  { %2167 = vmatmul.mubr.msk.bf16.vlgmr.msra.gmra.mrb[8].mxu0 %vm377_vm3, %v523_v14  ;;  %v793_v14 = vsel %vm575_vm4, %v324_v13, 0 }
 0x48c   :  { %2178 = vmatprep.mubr.msk.bf16.mxu0 %vm2820_vm0, %v2819_v0  ;;  %2177 = vmatpush3.bf16.msra.mxu0 %v624_v18 }
 0x48d   :  { %2188 = vmatprep.subr.bf16.mxu0 %v2819_v0 }
 0x556   :  { %v441_v21 = vpop.f32.mrb[4].mxu0 }
 0x557   :  { %v2156_v23 = vpop.f32.mrb[5].mxu0 }
 0x558   :  { %v444_v25 = vpop.f32.mrb[6].mxu0 }
 0x559   :  { %v448_v26 = vpack.c.bf16 %v444_v25, %v441_v21  ;;  %v2157_v27 = vpop.f32.mrb[7].mxu0 }
 0x55b   :  { %2179 = vmatmul.mubr.msk.bf16.vlgmr.msra.gmra.mrb[12].mxu0 %vm329_vm2, %v448_v26 }
 0x55c   :  { %2190 = vmatprep.mubr.msk.bf16.mxu0 %vm2820_vm0, %v2819_v0 }
 0x55e   :  { %v564_v28 = vpop.f32.mrb[8].mxu0 }
 0x55f   :  { %v2168_v29 = vpop.f32.mrb[9].mxu0 }
 0x560   :  { %v567_v31 = vpop.f32.mrb[10].mxu0 }
 0x561   :  { %v571_v32 = vpack.c.bf16 %v567_v31, %v564_v28  ;;  %v2169_v33 = vpop.f32.mrb[11].mxu0 }
 0x563   :  { %2173 = vmatmul.mubr.msk.bf16.vlgmr.msra.gmra.mrb[8].mxu1 %vm329_vm2, %v571_v32 }
 0x564   :  { %2183 = vmatpush3.bf16.xpose.msra.mxu1 %v675_v34  ;;  %2184 = vmatprep.mubr.msk.bf16.mxu1 %vm2820_vm0, %v2819_v0 }
 0x565   :  { %2194 = vmatprep.subr.bf16.mxu1 %v2819_v0 }
 0x56b   :  { %2185 = vmatmul.mubr.msk.bf16.vlgmr.msra.gmra.mrb[12].mxu1 %vm329_vm2, %v668_v35 }
 0x56c   :  { %2196 = vmatprep.mubr.msk.bf16.mxu1 %vm2820_vm0, %v2819_v0  ;;  %2195 = vmatpush3.bf16.msra.mxu1 %v793_v14 }
 0x56d   :  { %2206 = vmatprep.subr.bf16.mxu1 %v2819_v0 }
 0x62e   :  { %v660_v36 = vpop.f32.mrb[12].mxu0 }
 0x62f   :  { %v2180_v37 = vpop.f32.mrb[13].mxu0 }
 0x630   :  { %v663_v38 = vpop.f32.mrb[14].mxu0 }
 0x631   :  { %v2181_v39 = vpop.f32.mrb[15].mxu0 }
 0x636   :  { %v613_v40 = vpop.f32.mrb[8].mxu1 }
 0x637   :  { %v3232_v41 = vadd.f32 %v660_v36, %v613_v40  ;;  %v2174_v42 = vpop.f32.mrb[9].mxu1 }
 0x638   :  { %v616_v43 = vpop.f32.mrb[10].mxu1 }
 0x639   :  { %v3234_v44 = vadd.f32 %v663_v38, %v616_v43  ;;  %v2175_v45 = vpop.f32.mrb[11].mxu1 }
 0x63e   :  { %v711_v46 = vpop.f32.mrb[12].mxu1 }
 0x63f   :  { %v712_v47 = vadd.f32 %v711_v46, %v3185_v22  ;;  %v2186_v48 = vpop.f32.mrb[13].mxu1 }
 0x640   :  { %v714_v49 = vpop.f32.mrb[14].mxu1 }
 0x641   :  { %v715_v50 = vadd.f32 %v714_v49, %v3187_v24  ;;  %v2187_v51 = vpop.f32.mrb[15].mxu1  ;;  %v718_v52 = vsel %vm377_vm3, %v712_v47, -inf }
 0x642   :  { %719 = vmax.xlane.f32.xlu1 %v718_v52 }
 0x643   :  { %v721_v53 = vsel %vm377_vm3, %v715_v50, -inf }
 0x644   :  { %722 = vmax.xlane.f32.xlu0 %v721_v53 }
 0x6cf   :  { %v720_v54 = vpop.xlane.xlu1 %719 }
 0x6d0   :  { %v724_v55 = vsub.f32 %v712_v47, %v720_v54 }
 0x6d1   :  { %v723_v56 = vpop.xlane.xlu0 %722 }
 0x6d2   :  { %v726_v57 = vmul.f32 1.442695, %v724_v55  ;;  %v725_v58 = vsub.f32 %v715_v50, %v723_v56 }
 0x6d4   :  { %2370 = vpow2.f32 %v726_v57  ;;  %v728_v59 = vmul.f32 1.442695, %v725_v58 }
 0x6d6   :  { %2372 = vpow2.f32 %v728_v59 }
 0x6de   :  { %v2371_v60 = vpop.eup %2370 }
 0x6df   :  { %v730_v61 = vsel %vm377_vm3, %v2371_v60, 0.0 }
 0x6e0   :  { %v2373_v62 = vpop.eup %2372  ;;  %731 = vadd.xlane.f32.xlu0 %v730_v61  ;;  %v2052_v61 = vld [vmem:[#allocation13] ss:$0 sm:$0xff] }
 0x6e1   :  { %v733_v63 = vsel %vm377_vm3, %v2373_v62, 0.0 }
 0x6e2   :  { %734 = vadd.xlane.f32.xlu1 %v733_v63 }
 0x6f3   :  { %840 = vrot.lane.b32.xlu1 %v3164_v15, %s2827_s2 }
 0x6f6   :  { %741 = vrot.lane.b32.xlu0 %v3164_v15, %s2828_s26 }
 0x6f7   :  { %838 = vrot.lane.b32.xlu1 %v3166_v16, %s2829_s11 }
 0x76d   :  { %v732_v1 = vpop.xlane.xlu0 %731 }
 0x76e   :  { %2374 = vrcp.f32 %v732_v1 }
 0x76f   :  { %v735_v2 = vpop.xlane.xlu1 %734 }
 0x770   :  { %2376 = vrcp.f32 %v735_v2 }
 0x771   :  { %v742_v5 = vpop.permute.xlu0 %741 }
 0x772   :  { %2189 = vmatpush3.bf16.msra.mxu0 %v742_v5 }
 0x773   :  { %2200 = vmatprep.subr.bf16.mxu0 %v2819_v0  ;;  %v841_v10 = vpop.permute.xlu1 %840 }
 0x774   :  { %v846_v12 = vsel %vm329_vm2, %v841_v10, 0 }
 0x777   :  { %v839_v16 = vpop.permute.xlu1 %838 }
 0x778   :  { %v2375_v6 = vpop.eup %2374 }
 0x779   :  { %v738_v8 = vmul.f32 %v2375_v6, %v2371_v60 }
 0x77a   :  { %v2377_v7 = vpop.eup %2376 }
 0x77b   :  { %v739_v9 = vmul.f32 %v2377_v7, %v2373_v62 }
 0x77d   :  { %v740_v11 = vpack.c.bf16 %v739_v9, %v738_v8 }
 0x77f   :  { %2191 = vmatmul.mubr.msk.bf16.vlgmr.msra.gmra.mrb[16].mxu0 %vm377_vm3, %v740_v11 }
 0x780   :  { %2201 = vmatpush3.bf16.xpose.msra.mxu0 %v846_v12  ;;  %2202 = vmatprep.mubr.msk.bf16.mxu0 %vm2820_vm0, %v2819_v0 }
 0x781   :  { %2212 = vmatprep.subr.bf16.mxu0 %v2819_v0 }
 0x787   :  { %2203 = vmatmul.mubr.msk.bf16.vlgmr.msra.gmra.mrb[20].mxu0 %vm329_vm2, %v839_v16 }
 0x788   :  { %2214 = vmatprep.mubr.msk.bf16.mxu0 %vm2820_vm0, %v2819_v0 }
 0x852   :  { %v781_v17 = vpop.f32.mrb[16].mxu0 }
 0x853   :  { %v2192_v18 = vpop.f32.mrb[17].mxu0 }
 0x854   :  { %v784_v19 = vpop.f32.mrb[18].mxu0 }
 0x855   :  { %v788_v20 = vpack.c.bf16 %v784_v19, %v781_v17  ;;  %v2193_v21 = vpop.f32.mrb[19].mxu0 }
 0x857   :  { %2197 = vmatmul.mubr.msk.bf16.vlgmr.msra.gmra.mrb[16].mxu1 %vm329_vm2, %v788_v20 }
 0x858   :  { %2208 = vmatprep.mubr.msk.bf16.mxu1 %vm2820_vm0, %v2819_v0 }
 0x85a   :  { %v882_v23 = vpop.f32.mrb[20].mxu0 }
 0x85b   :  { %v883_v25 = vadd.f32 %v882_v23, %v3185_v22  ;;  %v2204_v26 = vpop.f32.mrb[21].mxu0  ;;  %v2348_v23 = vld [vmem:[#allocation14] sm:$0xff]  }
 0x85c   :  { %v885_v27 = vpop.f32.mrb[22].mxu0 }
 0x85d   :  { %v886_v28 = vadd.f32 %v885_v27, %v3187_v24  ;;  %v2205_v29 = vpop.f32.mrb[23].mxu0  ;;  %v889_v30 = vsel %vm377_vm3, %v883_v25, -inf }
 0x85e   :  { %890 = vmax.xlane.f32.xlu0 %v889_v30 }
 0x85f   :  { %v892_v31 = vsel %vm377_vm3, %v886_v28, -inf }
 0x860   :  { %893 = vmax.xlane.f32.xlu1 %v892_v31 }
 0x871   :  { %912 = vrot.lane.b32.xlu1 %v3164_v15, %s2830_s3 }
 0x8eb   :  { %v891_v32 = vpop.xlane.xlu0 %890 }
 0x8ec   :  { %v895_v33 = vsub.f32 %v883_v25, %v891_v32 }
 0x8ed   :  { %v894_v34 = vpop.xlane.xlu1 %893 }
 0x8ee   :  { %v897_v35 = vmul.f32 1.442695, %v895_v33  ;;  %v896_v22 = vsub.f32 %v886_v28, %v894_v34 }
 0x8f0   :  { %2378 = vpow2.f32 %v897_v35  ;;  %v899_v36 = vmul.f32 1.442695, %v896_v22  ;;  %v2053_v22 = vld [vmem:[#allocation16] ss:$0 sm:$0xff] }
 0x8f1   :  { %v913_v37 = vpop.permute.xlu1 %912 }
 0x8f2   :  { %2380 = vpow2.f32 %v899_v36  ;;  %2207 = vmatpush3.bf16.msra.mxu1 %v913_v37 }
 0x8f3   :  { %2218 = vmatprep.subr.bf16.mxu1 %v2819_v0 }
 0x8fa   :  { %v2379_v24 = vpop.eup %2378 }
 0x8fb   :  { %v901_v38 = vsel %vm377_vm3, %v2379_v24, 0.0 }
 0x8fc   :  { %v2381_v39 = vpop.eup %2380  ;;  %902 = vadd.xlane.f32.xlu0 %v901_v38 }
 0x8fd   :  { %v904_v40 = vsel %vm377_vm3, %v2381_v39, 0.0 }
 0x900   :  { %905 = vadd.xlane.f32.xlu0 %v904_v40 }
 0x92a   :  { %v829_v15 = vpop.f32.mrb[16].mxu1 }
 0x92b   :  { %v836_v42 = vadd.f32 %v829_v15, %v3232_v41  ;;  %v2198_v43 = vpop.f32.mrb[17].mxu1  ;;  %v325_v41 = vld [vmem:[#allocation11 + $0xc] sm:$0xf] }
 0x92c   :  { %v832_v45 = vpop.f32.mrb[18].mxu1  ;;  %v964_v55 = vsel %vm575_vm4, %v325_v41, 0 }
 0x92d   :  { %v837_v46 = vadd.f32 %v832_v45, %v3234_v44  ;;  %v2199_v47 = vpop.f32.mrb[19].mxu1  ;;  %2213 = vmatpush3.bf16.msra.mxu0 %v964_v55 }
 0x92e   :  { %2226 = vmatprep.subr.bf16.mxu0 %v2819_v0 }
 0x989   :  { %v903_v48 = vpop.xlane.xlu0 %902 }
 0x98a   :  { %2382 = vrcp.f32 %v903_v48 }
 0x98d   :  { %v906_v49 = vpop.xlane.xlu0 %905 }
 0x98e   :  { %2384 = vrcp.f32 %v906_v49 }
 0x994   :  { %v2383_v50 = vpop.eup %2382 }
 0x995   :  { %v909_v52 = vmul.f32 %v2383_v50, %v2379_v24 }
 0x998   :  { %v2385_v51 = vpop.eup %2384 }
 0x999   :  { %v910_v53 = vmul.f32 %v2385_v51, %v2381_v39  ;;  %v3319_v51 = vld [vmem:[#allocation7] sm:$0xff] }
 0x99b   :  { %v911_v54 = vpack.c.bf16 %v910_v53, %v909_v52  ;;  %v3321_v53 = vld [vmem:[#allocation7 + $0x8] sm:$0xff] }
 0x99d   :  { %2209 = vmatmul.mubr.msk.bf16.vlgmr.msra.gmra.mrb[20].mxu1 %vm377_vm3, %v911_v54 }
 0x99e   :  { %2222 = vmatprep.mubr.msk.bf16.mxu1 %vm2820_vm0, %v2819_v0  ;;  %2219 = vmatpush3.bf16.msra.mxu1 %v2348_v23 }
 0x99f   :  { %2220 = vmatprep.subr.bf16.mxu1 %v2819_v0 }
 0xa70   :  { %v952_v44 = vpop.f32.mrb[20].mxu1 }
 0xa71   :  { %v2210_v56 = vpop.f32.mrb[21].mxu1 }
 0xa72   :  { %v955_v57 = vpop.f32.mrb[22].mxu1 }
 0xa73   :  { %v959_v58 = vpack.c.bf16 %v955_v57, %v952_v44  ;;  %v2211_v59 = vpop.f32.mrb[23].mxu1 }
 0xa75   :  { %2215 = vmatmul.mubr.msk.bf16.vlgmr.msra.gmra.mrb[24].mxu0 %vm329_vm2, %v959_v58 }
 0xa76   :  { %2228 = vmatprep.mubr.msk.bf16.mxu0 %vm2820_vm0, %v2819_v0 }
 0xb48   :  { %v1000_v60 = vpop.f32.mrb[24].mxu0 }
 0xb49   :  { %v1007_v62 = vadd.f32 %v1000_v60, %v836_v42  ;;  %v2216_v63 = vpop.f32.mrb[25].mxu0 }
 0xb4a   :  { %v1003_v1 = vpop.f32.mrb[26].mxu0 }
 0xb4b   :  { %v1016_v2 = vadd.f32 %v2052_v61, %v1007_v62  ;;  %v1008_v5 = vadd.f32 %v1003_v1, %v837_v46  ;;  %v2217_v6 = vpop.f32.mrb[27].mxu0 }
 0xb4d   :  { %v1017_v7 = vadd.f32 %v2052_v61, %v1008_v5  ;;  %v1018_v8 = vadd.f32 %v1016_v2, %v3153_v3 }
 0xb4f   :  { %v1020_v9 = vsel %vm273_vm1, %v1018_v8, 0.0  ;;  %v1019_v10 = vadd.f32 %v1017_v7, %v3155_v4  ;;  %v2349_v4 = vld [vmem:[#allocation14 + $0x8] sm:$0xff]  }
 0xb50   :  { %1021 = vadd.xlane.f32.xlu0 %v1020_v9  ;;  %2221 = vmatpush3.bf16.msra.mxu1 %v2349_v4 }
 0xb51   :  { %v1023_v11 = vsel %vm273_vm1, %v1019_v10, 0.0  ;;  %2232 = vmatprep.subr.bf16.mxu1 %v2819_v0 }
 0xb54   :  { %1024 = vadd.xlane.f32.xlu0 %v1023_v11 }
 0xbdd   :  { %v1022_v12 = vpop.xlane.xlu0 %1021 }
 0xbde   :  { %v1027_v16 = vmul.f32 0.03125, %v1022_v12 }
 0xbe0   :  { %v1029_v13 = vsub.f32 %v1018_v8, %v1027_v16 }
 0xbe1   :  { %v1025_v14 = vpop.xlane.xlu0 %1024 }
 0xbe2   :  { %v1028_v17 = vmul.f32 0.03125, %v1025_v14  ;;  %v1031_v18 = vmul.f32 %v1029_v13, %v1029_v13 }
 0xbe4   :  { %v1030_v19 = vsub.f32 %v1019_v10, %v1028_v17  ;;  %v1033_v20 = vsel %vm273_vm1, %v1031_v18, 0.0 }
 0xbe5   :  { %1034 = vadd.xlane.f32.xlu0 %v1033_v20 }
 0xbe6   :  { %v1032_v21 = vmul.f32 %v1030_v19, %v1030_v19 }
 0xbe8   :  { %v1036_v3 = vsel %vm273_vm1, %v1032_v21, 0.0 }
 0xbe9   :  { %1037 = vadd.xlane.f32.xlu0 %v1036_v3 }
 0xc72   :  { %v1035_v25 = vpop.xlane.xlu0 %1034 }
 0xc73   :  { %v1039_v26 = vmul.f32 0.03125, %v1035_v25 }
 0xc75   :  { %v1041_v27 = vadd.f32 1e-05, %v1039_v26 }
 0xc76   :  { %v1038_v28 = vpop.xlane.xlu0 %1037 }
 0xc77   :  { %v1040_v29 = vmul.f32 0.03125, %v1038_v28  ;;  %2386 = vrsqrt.f32 %v1041_v27 }
 0xc79   :  { %v1042_v30 = vadd.f32 1e-05, %v1040_v29 }
 0xc7b   :  { %2388 = vrsqrt.f32 %v1042_v30 }
 0xc81   :  { %v2387_v31 = vpop.eup %2386 }
 0xc82   :  { %v3289_v33 = vmul.f32 %v2387_v31, %v1029_v13 }
 0xc85   :  { %v2389_v32 = vpop.eup %2388 }
 0xc86   :  { %v3291_v34 = vmul.f32 %v2389_v32, %v1030_v19 }
 0xc88   :  { %v1047_v35 = vpack.c.bf16 %v3291_v34, %v3289_v33 }
 0xc8a   :  { %2223 = vmatmul.mubr.msk.bf16.vlgmr.msra.gmra.mrb[24].mxu1 %vm273_vm1, %v1047_v35 }
 0xc8b   :  { %2234 = vmatprep.mubr.msk.bf16.mxu1 %vm2820_vm0, %v2819_v0 }
 0xd5d   :  { %v1108_v36 = vpop.f32.mrb[24].mxu1 }
 0xd5e   :  { %v1109_v37 = vadd.f32 %v2053_v22, %v1108_v36  ;;  %v2224_v24 = vpop.f32.mrb[25].mxu1 }
 0xd5f   :  { %v1111_v38 = vpop.f32.mrb[26].mxu1 }
 0xd60   :  { %v1112_v39 = vadd.f32 %v2053_v22, %v1111_v38  ;;  %v2225_v40 = vpop.f32.mrb[27].mxu1  ;;  %v1115_v15 = vmul.f32 0.35355338, %v1109_v37 }
 0xd62   :  { %v1116_v42 = vmul.f32 0.35355338, %v1112_v39  ;;  %v3298_v43 = vpack.c.bf16 %v1112_v39, %v1109_v37 }
 0xd64   :  { %v3300_v45 = vpack.c.bf16 %v1116_v42, %v1115_v15  ;;  %1247 = vrot.lane.b32.xlu0 %v3298_v43, %s2823_s23  ;;  %1124 = vrot.lane.b32.xlu1 %v3298_v43, %s2821_s14 }
 0xd68   :  { %1245 = vrot.lane.b32.xlu1 %v3300_v45, %s2822_s16 }
 0xdd6   :  { %v1125_v46 = vpop.permute.xlu1 %1124  ;;  %v1248_v48 = vpop.permute.xlu0 %1247 }
 0xdd7   :  { %v1130_v47 = vsel %vm329_vm2, %v1125_v46, 0  ;;  %v1253_v49 = vsel %vm329_vm2, %v1248_v48, 0  ;;  %v1119_v46 = vld [vmem:[#allocation17] sm:$0xf]  ;;  %v1120_v48 = vld [vmem:[#allocation17 + $0x4] sm:$0xf] }
 0xdd8   :  { %2227 = vmatpush3.bf16.xpose.msra.mxu0 %v1130_v47  ;;  %v1418_v47 = vsel %vm575_vm4, %v1119_v46, 0 }
 0xdd9   :  { %2238 = vmatprep.subr.bf16.mxu0 %v2819_v0 }
 0xdda   :  { %v1246_v50 = vpop.permute.xlu1 %1245 }
 0xddf   :  { %2229 = vmatmul.mubr.msk.bf16.vlgmr.msra.gmra.mrb[28].mxu0 %vm329_vm2, %v3300_v45 }
 0xde0   :  { %2239 = vmatpush3.bf16.xpose.msra.mxu0 %v1253_v49  ;;  %2240 = vmatprep.mubr.msk.bf16.mxu0 %vm2820_vm0, %v2819_v0  ;;  %v1371_v49 = vsel %vm575_vm4, %v1120_v48, 0 }
 0xde1   :  { %2250 = vmatprep.subr.bf16.mxu0 %v2819_v0 }
 0xde7   :  { %2241 = vmatmul.mubr.msk.bf16.vlgmr.msra.gmra.mrb[32].mxu0 %vm329_vm2, %v1246_v50 }
 0xde8   :  { %2252 = vmatprep.mubr.msk.bf16.mxu0 %vm2820_vm0, %v2819_v0  ;;  %2251 = vmatpush3.bf16.msra.mxu0 %v1371_v49 }
 0xde9   :  { %2262 = vmatprep.subr.bf16.mxu0 %v2819_v0 }
 0xeb2   :  { %v1166_v52 = vpop.f32.mrb[28].mxu0 }
 0xeb3   :  { %v1167_v54 = vadd.f32 %v1166_v52, %v3319_v51  ;;  %v2230_v41 = vpop.f32.mrb[29].mxu0 }
 0xeb4   :  { %v1169_v55 = vpop.f32.mrb[30].mxu0 }
 0xeb5   :  { %v1170_v44 = vadd.f32 %v1169_v55, %v3321_v53  ;;  %v2231_v56 = vpop.f32.mrb[31].mxu0  ;;  %v1173_v57 = vsel %vm377_vm3, %v1167_v54, -inf }
 0xeb6   :  { %1174 = vmax.xlane.f32.xlu1 %v1173_v57 }
 0xeb7   :  { %v1176_v58 = vsel %vm377_vm3, %v1170_v44, -inf }
 0xeb8   :  { %1177 = vmax.xlane.f32.xlu0 %v1176_v58 }
 0xeba   :  { %v1289_v59 = vpop.f32.mrb[32].mxu0 }
 0xebb   :  { %v1290_v60 = vadd.f32 %v1289_v59, %v3319_v51  ;;  %v2242_v61 = vpop.f32.mrb[33].mxu0 }
 0xebc   :  { %v1292_v62 = vpop.f32.mrb[34].mxu0 }
 0xebd   :  { %v1293_v63 = vadd.f32 %v1292_v62, %v3321_v53  ;;  %v2243_v1 = vpop.f32.mrb[35].mxu0  ;;  %v1296_v2 = vsel %vm377_vm3, %v1290_v60, -inf }
 0xebe   :  { %1297 = vmax.xlane.f32.xlu1 %v1296_v2 }
 0xebf   :  { %v1299_v5 = vsel %vm377_vm3, %v1293_v63, -inf }
 0xec2   :  { %1300 = vmax.xlane.f32.xlu1 %v1299_v5 }
 0xf43   :  { %v1175_v6 = vpop.xlane.xlu1 %1174 }
 0xf44   :  { %v1179_v7 = vsub.f32 %v1167_v54, %v1175_v6 }
 0xf45   :  { %v1178_v8 = vpop.xlane.xlu0 %1177 }
 0xf46   :  { %v1181_v9 = vmul.f32 1.442695, %v1179_v7  ;;  %v1180_v10 = vsub.f32 %v1170_v44, %v1178_v8 }
 0xf48   :  { %2390 = vpow2.f32 %v1181_v9  ;;  %v1183_v11 = vmul.f32 1.442695, %v1180_v10 }
 0xf4a   :  { %2392 = vpow2.f32 %v1183_v11 }
 0xf4b   :  { %v1298_v12 = vpop.xlane.xlu1 %1297 }
 0xf4c   :  { %v1302_v16 = vsub.f32 %v1290_v60, %v1298_v12 }
 0xf4e   :  { %v1304_v13 = vmul.f32 1.442695, %v1302_v16 }
 0xf4f   :  { %v1301_v14 = vpop.xlane.xlu1 %1300 }
 0xf50   :  { %2394 = vpow2.f32 %v1304_v13  ;;  %v1303_v17 = vsub.f32 %v1293_v63, %v1301_v14 }
 0xf52   :  { %v2391_v18 = vpop.eup %2390  ;;  %v1306_v19 = vmul.f32 1.442695, %v1303_v17 }
 0xf53   :  { %v1185_v20 = vsel %vm377_vm3, %v2391_v18, 0.0 }
 0xf54   :  { %v2393_v21 = vpop.eup %2392  ;;  %2396 = vpow2.f32 %v1306_v19  ;;  %1186 = vadd.xlane.f32.xlu1 %v1185_v20 }
 0xf55   :  { %v1188_v3 = vsel %vm377_vm3, %v2393_v21, 0.0 }
 0xf56   :  { %1189 = vadd.xlane.f32.xlu0 %v1188_v3 }
 0xf5a   :  { %v2395_v23 = vpop.eup %2394 }
 0xf5b   :  { %v1308_v4 = vsel %vm377_vm3, %v2395_v23, 0.0 }
 0xf5c   :  { %1309 = vadd.xlane.f32.xlu1 %v1308_v4 }
 0xf5e   :  { %v2397_v25 = vpop.eup %2396 }
 0xf5f   :  { %v1311_v26 = vsel %vm377_vm3, %v2397_v25, 0.0 }
 0xf60   :  { %1312 = vadd.xlane.f32.xlu0 %v1311_v26 }
 0xf6d   :  { %1196 = vrot.lane.b32.xlu1 %v3298_v43, %s2804_s1  ;;  %s2831_s1 = smov [#allocation26]  }
 0xf6e   :  { %s2017_s6 = sshll.u32 %s2831_s1, 4  ;;  %s2018_s6 = int_to_ptr.vmem [resolvable:$true] %s2017_s6 }
 0xf6f   :  { %s2760_s21 = scalar_lea.vmem %s2018_s6, 256  ;;  %p2765_p9 = scmp.lt.s32.totalorder %s2018_s6, %s2018_s6 }
 0xf70   :  { %p2761_p8 = scmp.ne.s32.totalorder %s2018_s6, %s2760_s21  ;;  %p2766_p10 = scmp.lt.s32.totalorder %s2760_s21, %s2760_s21 }
 0xf71   :  { %1463 = vrot.lane.b32.xlu1 %v3298_v43, %s2825_s5 }
 0xf72   :  { %p2767_p11 = por %p2766_p10, %p2765_p9 }
 0xf74   :  { %p2768_p12 = pnand %p2767_p11, %p2761_p8 }
 0xf75   :  { %1461 = vrot.lane.b32.xlu1 %v3300_v45, %s2826_s27 }
 0xf76   :  { %1319 = vrot.lane.b32.xlu0 %v3298_v43, %s2824_s25 }
 0xfe1   :  { %v1187_v27 = vpop.xlane.xlu1 %1186 }
 0xfe2   :  { %2398 = vrcp.f32 %v1187_v27 }
 0xfe3   :  { %v1190_v28 = vpop.xlane.xlu0 %1189 }
 0xfe4   :  { %2400 = vrcp.f32 %v1190_v28 }
 0xfe9   :  { %v1310_v29 = vpop.xlane.xlu1 %1309 }
 0xfea   :  { %2402 = vrcp.f32 %v1310_v29 }
 0xfec   :  { %v2399_v30 = vpop.eup %2398 }
 0xfed   :  { %v1313_v31 = vpop.xlane.xlu0 %1312  ;;  %v1197_v32 = vpop.permute.xlu1 %1196  ;;  %v1193_v22 = vmul.f32 %v2399_v30, %v2391_v18 }
 0xfee   :  { %v2401_v35 = vpop.eup %2400  ;;  %2404 = vrcp.f32 %v1313_v31  ;;  %2233 = vmatpush3.bf16.msra.mxu1 %v1197_v32 }
 0xfef   :  { %v1194_v36 = vmul.f32 %v2401_v35, %v2393_v21  ;;  %2244 = vmatprep.subr.bf16.mxu1 %v2819_v0 }
 0xff1   :  { %v1320_v37 = vpop.permute.xlu0 %1319  ;;  %v1195_v24 = vpack.c.bf16 %v1194_v36, %v1193_v22  ;;  %v1464_v57 = vpop.permute.xlu1 %1463 }
 0xff2   :  { %v1469_v61 = vsel %vm329_vm2, %v1464_v57, 0 }
 0xff3   :  { %2235 = vmatmul.mubr.msk.bf16.vlgmr.msra.gmra.mrb[28].mxu1 %vm377_vm3, %v1195_v24 }
 0xff4   :  { %2245 = vmatpush3.bf16.msra.mxu1 %v1320_v37  ;;  %2246 = vmatprep.mubr.msk.bf16.mxu1 %vm2820_vm0, %v2819_v0  ;;  %v2403_v38 = vpop.eup %2402 }
 0xff5   :  { %2256 = vmatprep.subr.bf16.mxu1 %v2819_v0  ;;  %v1316_v40 = vmul.f32 %v2403_v38, %v2395_v23  ;;  %v1462_v62 = vpop.permute.xlu1 %1461 }
 0xff8   :  { %v2405_v39 = vpop.eup %2404 }
 0xff9   :  { %v1317_v15 = vmul.f32 %v2405_v39, %v2397_v25 }
 0xffb   :  { %v1318_v42 = vpack.c.bf16 %v1317_v15, %v1316_v40  ;;  %v1121_v15 = vld [vmem:[#allocation17 + $0x8] sm:$0xf] }
 0xffd   :  { %2247 = vmatmul.mubr.msk.bf16.vlgmr.msra.gmra.mrb[32].mxu1 %vm377_vm3, %v1318_v42  ;;  %v1587_v42 = vsel %vm575_vm4, %v1121_v15, 0 }
 0xffe   :  { %2258 = vmatprep.mubr.msk.bf16.mxu1 %vm2820_vm0, %v2819_v0  ;;  %2257 = vmatpush3.bf16.msra.mxu1 %v1418_v47 }
 0xfff   :  { %2268 = vmatprep.subr.bf16.mxu1 %v2819_v0 }
0x10c6   :  { %v1236_v50 = vpop.f32.mrb[28].mxu1 }
0x10c7   :  { %v2236_v52 = vpop.f32.mrb[29].mxu1 }
0x10c8   :  { %v1239_v54 = vpop.f32.mrb[30].mxu1 }
0x10c9   :  { %v1243_v41 = vpack.c.bf16 %v1239_v54, %v1236_v50  ;;  %v2237_v55 = vpop.f32.mrb[31].mxu1 }
0x10cb   :  { %2259 = vmatmul.mubr.msk.bf16.vlgmr.msra.gmra.mrb[36].mxu1 %vm329_vm2, %v1243_v41 }
0x10cc   :  { %2270 = vmatprep.mubr.msk.bf16.mxu1 %vm2820_vm0, %v2819_v0 }
0x10d0   :  { %v1359_v44 = vpop.f32.mrb[32].mxu1 }
0x10d1   :  { %v2248_v56 = vpop.f32.mrb[33].mxu1 }
0x10d2   :  { %v1362_v58 = vpop.f32.mrb[34].mxu1 }
0x10d3   :  { %v1366_v59 = vpack.c.bf16 %v1362_v58, %v1359_v44  ;;  %v2249_v60 = vpop.f32.mrb[35].mxu1 }
0x10d5   :  { %2253 = vmatmul.mubr.msk.bf16.vlgmr.msra.gmra.mrb[36].mxu0 %vm329_vm2, %v1366_v59 }
0x10d6   :  { %2263 = vmatpush3.bf16.xpose.msra.mxu0 %v1469_v61  ;;  %2264 = vmatprep.mubr.msk.bf16.mxu0 %vm2820_vm0, %v2819_v0 }
0x10d7   :  { %2274 = vmatprep.subr.bf16.mxu0 %v2819_v0 }
0x10dd   :  { %2265 = vmatmul.mubr.msk.bf16.vlgmr.msra.gmra.mrb[40].mxu0 %vm329_vm2, %v1462_v62 }
0x10de   :  { %2276 = vmatprep.mubr.msk.bf16.mxu0 %vm2820_vm0, %v2819_v0  ;;  %2275 = vmatpush3.bf16.msra.mxu0 %v1587_v42 }
0x10df   :  { %2286 = vmatprep.subr.bf16.mxu0 %v2819_v0 }
0x119e   :  { %v1454_v63 = vpop.f32.mrb[36].mxu1 }
0x119f   :  { %v2260_v1 = vpop.f32.mrb[37].mxu1 }
0x11a0   :  { %v1457_v2 = vpop.f32.mrb[38].mxu1 }
0x11a1   :  { %v2261_v5 = vpop.f32.mrb[39].mxu1 }
0x11a8   :  { %v1407_v6 = vpop.f32.mrb[36].mxu0 }
0x11a9   :  { %v3366_v7 = vadd.f32 %v1454_v63, %v1407_v6  ;;  %v2254_v8 = vpop.f32.mrb[37].mxu0 }
0x11aa   :  { %v1410_v9 = vpop.f32.mrb[38].mxu0 }
0x11ab   :  { %v3368_v10 = vadd.f32 %v1457_v2, %v1410_v9  ;;  %v2255_v11 = vpop.f32.mrb[39].mxu0 }
0x11b0   :  { %v1505_v12 = vpop.f32.mrb[40].mxu0 }
0x11b1   :  { %v1506_v16 = vadd.f32 %v1505_v12, %v3319_v51  ;;  %v2266_v13 = vpop.f32.mrb[41].mxu0 }
0x11b2   :  { %v1508_v14 = vpop.f32.mrb[42].mxu0 }
0x11b3   :  { %v1509_v17 = vadd.f32 %v1508_v14, %v3321_v53  ;;  %v2267_v18 = vpop.f32.mrb[43].mxu0  ;;  %v1512_v19 = vsel %vm377_vm3, %v1506_v16, -inf }
0x11b4   :  { %1513 = vmax.xlane.f32.xlu0 %v1512_v19 }
0x11b5   :  { %v1515_v20 = vsel %vm377_vm3, %v1509_v17, -inf }
0x11b6   :  { %1516 = vmax.xlane.f32.xlu1 %v1515_v20 }
0x11c7   :  { %1535 = vrot.lane.b32.xlu1 %v3298_v43, %s2828_s26 }
0x11cb   :  { %1632 = vrot.lane.b32.xlu1 %v3300_v45, %s2829_s11 }
0x1241   :  { %v1514_v21 = vpop.xlane.xlu0 %1513 }
0x1242   :  { %v1518_v3 = vsub.f32 %v1506_v16, %v1514_v21 }
0x1243   :  { %v1517_v23 = vpop.xlane.xlu1 %1516 }
0x1244   :  { %v1520_v4 = vmul.f32 1.442695, %v1518_v3  ;;  %v1519_v25 = vsub.f32 %v1509_v17, %v1517_v23 }
0x1246   :  { %2406 = vpow2.f32 %v1520_v4  ;;  %v1522_v26 = vmul.f32 1.442695, %v1519_v25 }
0x1247   :  { %v1536_v27 = vpop.permute.xlu1 %1535 }
0x1248   :  { %2408 = vpow2.f32 %v1522_v26  ;;  %2269 = vmatpush3.bf16.msra.mxu1 %v1536_v27 }
0x1249   :  { %2280 = vmatprep.subr.bf16.mxu1 %v2819_v0 }
0x124b   :  { %v1633_v40 = vpop.permute.xlu1 %1632 }
0x1250   :  { %v2407_v28 = vpop.eup %2406 }
0x1251   :  { %v1524_v29 = vsel %vm377_vm3, %v2407_v28, 0.0 }
0x1252   :  { %v2409_v30 = vpop.eup %2408  ;;  %1525 = vadd.xlane.f32.xlu0 %v1524_v29 }
0x1253   :  { %v1527_v31 = vsel %vm377_vm3, %v2409_v30, 0.0 }
0x1256   :  { %1528 = vadd.xlane.f32.xlu0 %v1527_v31 }
0x126c   :  { %1634 = vrot.lane.b32.xlu0 %v3298_v43, %s2827_s2 }
0x12df   :  { %v1526_v45 = vpop.xlane.xlu0 %1525 }
0x12e0   :  { %2410 = vrcp.f32 %v1526_v45 }
0x12e3   :  { %v1529_v32 = vpop.xlane.xlu0 %1528 }
0x12e4   :  { %2412 = vrcp.f32 %v1529_v32 }
0x12e7   :  { %v1635_v24 = vpop.permute.xlu0 %1634 }
0x12e8   :  { %v1640_v39 = vsel %vm329_vm2, %v1635_v24, 0 }
0x12ea   :  { %v2411_v35 = vpop.eup %2410 }
0x12eb   :  { %v1532_v36 = vmul.f32 %v2411_v35, %v2407_v28  ;;  %v2069_v28 = vld [vmem:[#allocation19] ss:$0 sm:$0xff] }
0x12ee   :  { %v2413_v22 = vpop.eup %2412 }
0x12ef   :  { %v1533_v37 = vmul.f32 %v2413_v22, %v2409_v30 }
0x12f1   :  { %v1534_v38 = vpack.c.bf16 %v1533_v37, %v1532_v36 }
0x12f3   :  { %2271 = vmatmul.mubr.msk.bf16.vlgmr.msra.gmra.mrb[40].mxu1 %vm377_vm3, %v1534_v38 }
0x12f4   :  { %2281 = vmatpush3.bf16.xpose.msra.mxu1 %v1640_v39  ;;  %2282 = vmatprep.mubr.msk.bf16.mxu1 %vm2820_vm0, %v2819_v0 }
0x12f5   :  { %2292 = vmatprep.subr.bf16.mxu1 %v2819_v0 }
0x12fb   :  { %2283 = vmatmul.mubr.msk.bf16.vlgmr.msra.gmra.mrb[44].mxu1 %vm329_vm2, %v1633_v40 }
0x12fc   :  { %2294 = vmatprep.mubr.msk.bf16.mxu1 %vm2820_vm0, %v2819_v0 }
0x13c6   :  { %v1575_v46 = vpop.f32.mrb[40].mxu1 }
0x13c7   :  { %v2272_v47 = vpop.f32.mrb[41].mxu1 }
0x13c8   :  { %v1578_v48 = vpop.f32.mrb[42].mxu1 }
0x13c9   :  { %v1582_v49 = vpack.c.bf16 %v1578_v48, %v1575_v46  ;;  %v2273_v50 = vpop.f32.mrb[43].mxu1 }
0x13cb   :  { %2277 = vmatmul.mubr.msk.bf16.vlgmr.msra.gmra.mrb[44].mxu0 %vm329_vm2, %v1582_v49 }
0x13cc   :  { %2288 = vmatprep.mubr.msk.bf16.mxu0 %vm2820_vm0, %v2819_v0 }
0x13ce   :  { %v1676_v52 = vpop.f32.mrb[44].mxu1 }
0x13cf   :  { %v1677_v54 = vadd.f32 %v1676_v52, %v3319_v51  ;;  %v2284_v41 = vpop.f32.mrb[45].mxu1  ;;  %v2350_v52 = vld [vmem:[#allocation20] sm:$0xff]  }
0x13d0   :  { %v1679_v55 = vpop.f32.mrb[46].mxu1 }
0x13d1   :  { %v1680_v44 = vadd.f32 %v1679_v55, %v3321_v53  ;;  %v2285_v56 = vpop.f32.mrb[47].mxu1  ;;  %v1683_v57 = vsel %vm377_vm3, %v1677_v54, -inf }
0x13d2   :  { %1684 = vmax.xlane.f32.xlu1 %v1683_v57 }
0x13d3   :  { %v1686_v58 = vsel %vm377_vm3, %v1680_v44, -inf }
0x13d4   :  { %1687 = vmax.xlane.f32.xlu0 %v1686_v58 }
0x145f   :  { %v1685_v59 = vpop.xlane.xlu1 %1684 }
0x1460   :  { %v1689_v60 = vsub.f32 %v1677_v54, %v1685_v59 }
0x1461   :  { %v1688_v61 = vpop.xlane.xlu0 %1687 }
0x1462   :  { %v1691_v62 = vmul.f32 1.442695, %v1689_v60  ;;  %v1690_v63 = vsub.f32 %v1680_v44, %v1688_v61 }
0x1464   :  { %2414 = vpow2.f32 %v1691_v62  ;;  %v1693_v1 = vmul.f32 1.442695, %v1690_v63  ;;  %v2352_v63 = vld [vmem:[#allocation23] sm:$0xff]  }
0x1466   :  { %2416 = vpow2.f32 %v1693_v1  ;;  %v2353_v1 = vld [vmem:[#allocation23 + $0x8] sm:$0xff]  }
0x146e   :  { %v2415_v51 = vpop.eup %2414 }
0x146f   :  { %v1695_v2 = vsel %vm377_vm3, %v2415_v51, 0.0 }
0x1470   :  { %v2417_v5 = vpop.eup %2416  ;;  %1696 = vadd.xlane.f32.xlu0 %v1695_v2 }
0x1471   :  { %v1698_v53 = vsel %vm377_vm3, %v2417_v5, 0.0 }
0x1472   :  { %1699 = vadd.xlane.f32.xlu1 %v1698_v53 }
0x1486   :  { %1706 = vrot.lane.b32.xlu0 %v3298_v43, %s2830_s3 }
0x149e   :  { %v1623_v6 = vpop.f32.mrb[44].mxu0 }
0x149f   :  { %v1630_v8 = vadd.f32 %v1623_v6, %v3366_v7  ;;  %v2278_v9 = vpop.f32.mrb[45].mxu0  ;;  %v1122_v7 = vld [vmem:[#allocation17 + $0xc] sm:$0xf] }
0x14a0   :  { %v1626_v11 = vpop.f32.mrb[46].mxu0 }
0x14a1   :  { %v1631_v12 = vadd.f32 %v1626_v11, %v3368_v10  ;;  %v2279_v16 = vpop.f32.mrb[47].mxu0  ;;  %v1758_v10 = vsel %vm575_vm4, %v1122_v7, 0 }
0x14a2   :  { %2293 = vmatpush3.bf16.msra.mxu1 %v1758_v10 }
0x14a3   :  { %2306 = vmatprep.subr.bf16.mxu1 %v2819_v0 }
0x14fd   :  { %v1697_v13 = vpop.xlane.xlu0 %1696 }
0x14fe   :  { %2418 = vrcp.f32 %v1697_v13 }
0x14ff   :  { %v1700_v14 = vpop.xlane.xlu1 %1699 }
0x1500   :  { %2420 = vrcp.f32 %v1700_v14 }
0x1501   :  { %v1707_v17 = vpop.permute.xlu0 %1706 }
0x1502   :  { %2287 = vmatpush3.bf16.msra.mxu0 %v1707_v17  ;;  %v2074_v17 = vld [vmem:[#allocation25] ss:$0 sm:$0xff] }
0x1503   :  { %2298 = vmatprep.subr.bf16.mxu0 %v2819_v0 }
0x1508   :  { %v2419_v18 = vpop.eup %2418 }
0x1509   :  { %v1703_v20 = vmul.f32 %v2419_v18, %v2415_v51  ;;  %v2070_v51 = vld [vmem:[#allocation22] ss:$0 sm:$0xff] }
0x150a   :  { %v2421_v19 = vpop.eup %2420 }
0x150b   :  { %v1704_v43 = vmul.f32 %v2421_v19, %v2417_v5 }
0x150d   :  { %v1705_v21 = vpack.c.bf16 %v1704_v43, %v1703_v20 }
0x150f   :  { %2289 = vmatmul.mubr.msk.bf16.vlgmr.msra.gmra.mrb[48].mxu0 %vm377_vm3, %v1705_v21 }
0x1510   :  { %2302 = vmatprep.mubr.msk.bf16.mxu0 %vm2820_vm0, %v2819_v0  ;;  %2299 = vmatpush3.bf16.msra.mxu0 %v2350_v52 }
0x1511   :  { %2300 = vmatprep.subr.bf16.mxu0 %v2819_v0 }
0x15e2   :  { %v1746_v3 = vpop.f32.mrb[48].mxu0 }
0x15e3   :  { %v2290_v23 = vpop.f32.mrb[49].mxu0 }
0x15e4   :  { %v1749_v4 = vpop.f32.mrb[50].mxu0 }
0x15e5   :  { %v1753_v25 = vpack.c.bf16 %v1749_v4, %v1746_v3  ;;  %v2291_v26 = vpop.f32.mrb[51].mxu0 }
0x15e7   :  { %2295 = vmatmul.mubr.msk.bf16.vlgmr.msra.gmra.mrb[48].mxu1 %vm329_vm2, %v1753_v25 }
0x15e8   :  { %2310 = vmatprep.mubr.msk.bf16.mxu1 %vm2820_vm0, %v2819_v0  ;;  %2307 = vmatpush3.bf16.msra.mxu1 %v2352_v63 }
0x15e9   :  { %2308 = vmatprep.subr.bf16.mxu1 %v2819_v0 }
0x15ec   :  { %2309 = vmatpush3.bf16.msra.mxu1 %v2353_v1 }
0x16ba   :  { %v1794_v27 = vpop.f32.mrb[48].mxu1 }
0x16bb   :  { %v1801_v29 = vadd.f32 %v1794_v27, %v1630_v8  ;;  %v2296_v30 = vpop.f32.mrb[49].mxu1 }
0x16bc   :  { %v1797_v31 = vpop.f32.mrb[50].mxu1 }
0x16bd   :  { %v1810_v45 = vadd.f32 %v2069_v28, %v1801_v29  ;;  %v1802_v32 = vadd.f32 %v1797_v31, %v1631_v12  ;;  %v2297_v35 = vpop.f32.mrb[51].mxu1 }
0x16bf   :  { %v1811_v22 = vadd.f32 %v2069_v28, %v1802_v32  ;;  %v1812_v36 = vadd.f32 %v1810_v45, %v3289_v33 }
0x16c1   :  { %v1814_v37 = vsel %vm273_vm1, %v1812_v36, 0.0  ;;  %v1813_v24 = vadd.f32 %v1811_v22, %v3291_v34  ;;  %v2351_v34 = vld [vmem:[#allocation20 + $0x8] sm:$0xff]  }
0x16c2   :  { %1815 = vadd.xlane.f32.xlu1 %v1814_v37  ;;  %2301 = vmatpush3.bf16.msra.mxu0 %v2351_v34 }
0x16c3   :  { %v1817_v38 = vsel %vm273_vm1, %v1813_v24, 0.0 }
0x16c6   :  { %1818 = vadd.xlane.f32.xlu1 %v1817_v38 }
0x174f   :  { %v1816_v39 = vpop.xlane.xlu1 %1815 }
0x1750   :  { %v1820_v40 = vmul.f32 0.03125, %v1816_v39 }
0x1752   :  { %v1822_v15 = vsub.f32 %v1812_v36, %v1820_v40 }
0x1753   :  { %v1819_v42 = vpop.xlane.xlu1 %1818 }
0x1754   :  { %v1821_v46 = vmul.f32 0.03125, %v1819_v42  ;;  %v1824_v47 = vmul.f32 %v1822_v15, %v1822_v15 }
0x1756   :  { %v1823_v48 = vsub.f32 %v1813_v24, %v1821_v46  ;;  %v1826_v49 = vsel %vm273_vm1, %v1824_v47, 0.0 }
0x1757   :  { %1827 = vadd.xlane.f32.xlu1 %v1826_v49 }
0x1758   :  { %v1825_v50 = vmul.f32 %v1823_v48, %v1823_v48 }
0x175a   :  { %v1829_v33 = vsel %vm273_vm1, %v1825_v50, 0.0 }
0x175b   :  { %1830 = vadd.xlane.f32.xlu1 %v1829_v33 }
0x17e4   :  { %v1828_v54 = vpop.xlane.xlu1 %1827 }
0x17e5   :  { %v1832_v41 = vmul.f32 0.03125, %v1828_v54 }
0x17e7   :  { %v1834_v55 = vadd.f32 1e-05, %v1832_v41 }
0x17e8   :  { %v1831_v44 = vpop.xlane.xlu1 %1830 }
0x17e9   :  { %v1833_v56 = vmul.f32 0.03125, %v1831_v44  ;;  %2422 = vrsqrt.f32 %v1834_v55 }
0x17eb   :  { %v1835_v57 = vadd.f32 1e-05, %v1833_v56 }
0x17ed   :  { %2424 = vrsqrt.f32 %v1835_v57 }
0x17f3   :  { %v2423_v58 = vpop.eup %2422 }
0x17f4   :  { %v1838_v60 = vmul.f32 %v2423_v58, %v1822_v15 }
0x17f7   :  { %v2425_v59 = vpop.eup %2424 }
0x17f8   :  { %v1839_v61 = vmul.f32 %v2425_v59, %v1823_v48 }
0x17fa   :  { %v1840_v62 = vpack.c.bf16 %v1839_v61, %v1838_v60 }
0x17fc   :  { %2303 = vmatmul.mubr.msk.bf16.vlgmr.msra.gmra.mrb[52].mxu0 %vm273_vm1, %v1840_v62 }
0x18cf   :  { %v1901_v2 = vpop.f32.mrb[52].mxu0 }
0x18d0   :  { %v1902_v5 = vadd.f32 %v2070_v51, %v1901_v2  ;;  %v2304_v53 = vpop.f32.mrb[53].mxu0 }
0x18d1   :  { %v1904_v6 = vpop.f32.mrb[54].mxu0 }
0x18d2   :  { %v1910_v8 = vmul.f32 0.01, %v1902_v5  ;;  %v1905_v9 = vadd.f32 %v2070_v51, %v1904_v6  ;;  %v2305_v11 = vpop.f32.mrb[55].mxu0  ;;  %vm1908_vm5 = vcmp.ge.f32.partialorder %v1902_v5, 0.0 }
0x18d4   :  { %vm1909_vm6 = vcmp.ge.f32.partialorder %v1905_v9, 0.0  ;;  %v1911_v12 = vmul.f32 0.01, %v1905_v9  ;;  %v1912_v16 = vsel %vm1908_vm5, %v1902_v5, %v1910_v8 }
0x18d6   :  { %v1913_v13 = vsel %vm1909_vm6, %v1905_v9, %v1911_v12 }
0x18d7   :  { %v1914_v14 = vpack.c.bf16 %v1913_v13, %v1912_v16 }
0x18d9   :  { %2311 = vmatmul.mubr.msk.bf16.vlgmr.msra.gmra.mrb[52].mxu1 %vm273_vm1, %v1914_v14 }
0x19ac   :  { %v1975_v0 = vpop.f32.mrb[52].mxu1 }
0x19ad   :  { %v1976_v18 = vadd.f32 %v2074_v17, %v1975_v0  ;;  %v2312_v19 = vpop.f32.mrb[53].mxu1 }
0x19ae   :  { %v1978_v20 = vpop.f32.mrb[54].mxu1 }
0x19af   :  { %v1979_v43 = vadd.f32 %v2074_v17, %v1978_v20  ;;  %v2313_v21 = vpop.f32.mrb[55].mxu1  ;;  %v1982_v7 = vadd.f32 %v1976_v18, %v1838_v60 }
0x19b1   :  { %v1984_v10 = vsel %vm273_vm1, %v1982_v7, 0.0  ;;  %v1983_v3 = vadd.f32 %v1979_v43, %v1839_v61 }
0x19b2   :  { %1985 = vadd.xlane.f32.xlu1 %v1984_v10 }
0x19b3   :  { %v1987_v23 = vsel %vm273_vm1, %v1983_v3, 0.0 }
0x19b6   :  { %1988 = vadd.xlane.f32.xlu1 %v1987_v23 }
0x1a3f   :  { %v1986_v4 = vpop.xlane.xlu1 %1985 }
0x1a40   :  { %v1990_v25 = vmul.f32 0.03125, %v1986_v4 }
0x1a42   :  { %v1992_v26 = vsub.f32 %v1982_v7, %v1990_v25 }
0x1a43   :  { %v1989_v27 = vpop.xlane.xlu1 %1988 }
0x1a44   :  { %v1991_v28 = vmul.f32 0.03125, %v1989_v27  ;;  %v1994_v29 = vmul.f32 %v1992_v26, %v1992_v26 }
0x1a46   :  { %v1993_v30 = vsub.f32 %v1983_v3, %v1991_v28  ;;  %v1996_v31 = vsel %vm273_vm1, %v1994_v29, 0.0 }
0x1a47   :  { %1997 = vadd.xlane.f32.xlu0 %v1996_v31 }
0x1a48   :  { %v1995_v45 = vmul.f32 %v1993_v30, %v1993_v30 }
0x1a4a   :  { %v1999_v32 = vsel %vm273_vm1, %v1995_v45, 0.0 }
0x1a4b   :  { %2000 = vadd.xlane.f32.xlu1 %v1999_v32 }
0x1ad4   :  { %v1998_v35 = vpop.xlane.xlu0 %1997 }
0x1ad5   :  { %v2002_v22 = vmul.f32 0.03125, %v1998_v35 }
0x1ad7   :  { %v2004_v36 = vadd.f32 1e-05, %v2002_v22 }
0x1ad8   :  { %v2001_v37 = vpop.xlane.xlu1 %2000 }
0x1ad9   :  { %2426 = vrsqrt.f32 %v2004_v36  ;;  %v2003_v24 = vmul.f32 0.03125, %v2001_v37 }
0x1adb   :  { %v2005_v38 = vadd.f32 1e-05, %v2003_v24 }
0x1add   :  { %2428 = vrsqrt.f32 %v2005_v38 }
0x1ae3   :  { %v2427_v39 = vpop.eup %2426 }
0x1ae4   :  { %v2008_v40 = vmul.f32 %v2427_v39, %v1992_v26 }
0x1ae6   :  { %2010 = vst.msk [vmem:[#allocation26] sm:$0xff] %vm273_vm1, %v2008_v40 }
0x1ae7   :  { %v2429_v15 = vpop.eup %2428 }
0x1ae8   :  { %v2009_v42 = vmul.f32 %v2429_v15, %v1993_v30 }
0x1aea   :  { %2011 = vst.msk [vmem:[#allocation26 + $0x8] sm:$0xff] %vm273_vm1, %v2009_v42 }
0x1aeb   :  { %2771 = shalt.err (!%p2768_p12)
}
0x1aec   :  { %s2772_s18 = scalar_lea.hbm %s3461_s15, 256 }
0x1aed   :  { %p2773_p13 = scmp.ne.s32.totalorder %s3461_s15, %s2772_s18  ;;  %p2776_p0 = scmp.lt.u32.totalorder %s2772_s18, %s3461_s15 }
0x1aef   :  { %p2778_p1 = pnand %p2776_p0, %p2773_p13 }
0x1af1   :  { %2781 = shalt.err (!%p2778_p1)
}
0x1af2   :  { %2023 = dma.vmem_to_hbm [thread:$0]  %s2018_s6, 256, %s3461_s15, [#allocation4], %s3467_s19, %s3467_s19, %s3466_s13  }
0x1af3   :  { %2798 = dma.done.wait [#allocation4], 256  }
0x1af4   :  { %2799 = vsyncadd [#allocation4], 4294967040 }
0x1af5   :  { %2027 = vsyncpa [#allocation3], 1 }
0x1af6   :  { %2028 = vsyncpa [#allocation6], 1 }
0x1af7   :  { %2029 = vsyncpa [#allocation9], 1 }
0x1af8   :  { %2030 = vsyncpa [#allocation12], 1 }
0x1af9   :  { %2031 = vsyncpa [#allocation15], 1 }
0x1afa   :  { %2032 = vsyncpa [#allocation18], 1 }
0x1afb   :  { %2033 = vsyncpa [#allocation21], 1 }
0x1afc   :  { %2034 = vsyncpa [#allocation24], 1 }
0x1afd   :  { %2035 = vsyncpa [#allocation4], 1 }

</bundles_post_ra>
